<compile_context>
chip_gen: v7x
topology: tpu7x:2x2x1
jax: 0.10.0
libtpu: 0.0.40
codegen_flags: <defaults>
</compile_context>

<pallas_src>
import jax
import jax.numpy as jnp
from jax.experimental import pallas as pl
from jax.experimental.pallas import tpu as pltpu

EPS = 1e-5


# ---------------------------------------------------------------------------
# Fused kernel: conv1(1x1)+BN+ReLU -> conv2(3x3)+BN+ReLU -> conv3(1x1)+BN
#               -> +identity -> ReLU
# ---------------------------------------------------------------------------
def _bottleneck_fused_kernel(x_ref, w1_ref, t1_ref, w2_ref, t2_ref, w3_ref,
                             t3_ref, o_ref, hp_ref, col_ref):
    # x_ref:  (M, Cin)        flattened (batch_block*H*W, Cin) input slab
    # w*_ref: BN-scale-folded conv weights; t*_ref: per-channel shifts (1, C)
    # hp_ref: (NB, H+2, W+2, Cmid) VMEM scratch (zero-padded mid activation)
    # col_ref:(M, 9*Cmid)     VMEM scratch (im2col tile)
    NB, Hp, Wp, Cmid = hp_ref.shape
    H, W = Hp - 2, Wp - 2
    M = x_ref.shape[0]
    Cout = w3_ref.shape[1]

    x = x_ref[...]                                            # (M, Cin)

    # ---- stage 1: 1x1 conv (+folded BN) + ReLU ---------------------------
    h1 = jnp.dot(x, w1_ref[...], preferred_element_type=jnp.float32)
    h1 = jnp.maximum(h1 + t1_ref[...], 0.0)                   # (M, Cmid) f32

    # ---- stage 2: 3x3 conv via in-VMEM zero pad + im2col single matmul ---
    hp_ref[...] = jnp.zeros(hp_ref.shape, hp_ref.dtype)       # zero border
    hp_ref[:, 1:H + 1, 1:W + 1, :] = (
        h1.reshape(NB, H, W, Cmid).astype(hp_ref.dtype))      # interior write
    hp = hp_ref[...]
    t = 0
    for kh in range(3):
        for kw in range(3):
            col_ref[:, t * Cmid:(t + 1) * Cmid] = (
                hp[:, kh:kh + H, kw:kw + W, :].reshape(M, Cmid))
            t += 1
    patches = col_ref[...]                                    # (M, 9*Cmid)
    h2 = jnp.dot(patches, w2_ref[...], preferred_element_type=jnp.float32)
    h2 = jnp.maximum(h2 + t2_ref[...], 0.0)                   # (M, Cmid) f32

    # ---- stage 3: 1x1 conv (+folded BN) + residual + ReLU ----------------
    y = jnp.dot(h2.astype(w3_ref.dtype), w3_ref[...],
                preferred_element_type=jnp.float32)
    y = y + t3_ref[...] + x.astype(jnp.float32)               # identity add
    o_ref[...] = jnp.maximum(y, 0.0).astype(o_ref.dtype)      # (M, Cout)


# ---------------------------------------------------------------------------
# Param folding + wrapper
# ---------------------------------------------------------------------------
def _fold_bn(bias, gamma, beta, mean, var):
    # BN(conv + bias) == (conv * scale) + shift   (per output channel)
    scale = gamma / jnp.sqrt(var + EPS)
    shift = beta + scale * (bias - mean)
    return scale.reshape(1, -1), shift.reshape(1, -1)


def bottleneck_forward(x_nchw, params, *, batch_block=None,
                       compute_dtype=jnp.float32):
    N, Cin, H, W = x_nchw.shape
    Cmid = params["w1"].shape[1]
    Cout = params["w3"].shape[1]
    assert Cout == Cin, "identity residual requires in_channels == 4*out_channels"
    if batch_block is None:
        batch_block = N                      # fold full batch into M (grid=(1,))
    assert N % batch_block == 0
    M_blk = batch_block * H * W

    # NHWC, flattened to a 2-D (N*H*W, Cin) slab (free XLA reshape).
    x_nhwc = jnp.transpose(x_nchw, (0, 2, 3, 1)).astype(jnp.float32)
    x2d = x_nhwc.reshape(N * H * W, Cin).astype(compute_dtype)

    s1, t1 = _fold_bn(params["b1"], params["g1"], params["be1"],
                      params["rm1"], params["rv1"])
    s2, t2 = _fold_bn(params["b2"], params["g2"], params["be2"],
                      params["rm2"], params["rv2"])
    s3, t3 = _fold_bn(params["b3"], params["g3"], params["be3"],
                      params["rm3"], params["rv3"])

    # Fold BN scales into the conv weights.
    w1s = (params["w1"] * s1).astype(compute_dtype)                    # (Cin, Cmid)
    w2s = (params["w2"] * s2.reshape(1, 1, 1, -1)).reshape(
        9 * Cmid, Cmid).astype(compute_dtype)                          # (9*Cmid, Cmid)
    w3s = (params["w3"] * s3).astype(compute_dtype)                    # (Cmid, Cout)

    grid = (N // batch_block,)
    out2d = pl.pallas_call(
        _bottleneck_fused_kernel,
        out_shape=jax.ShapeDtypeStruct((N * H * W, Cout), jnp.float32),
        grid=grid,
        in_specs=[
            pl.BlockSpec((M_blk, Cin), lambda i: (i, 0)),
            pl.BlockSpec((Cin, Cmid), lambda i: (0, 0)),
            pl.BlockSpec((1, Cmid), lambda i: (0, 0)),
            pl.BlockSpec((9 * Cmid, Cmid), lambda i: (0, 0)),
            pl.BlockSpec((1, Cmid), lambda i: (0, 0)),
            pl.BlockSpec((Cmid, Cout), lambda i: (0, 0)),
            pl.BlockSpec((1, Cout), lambda i: (0, 0)),
        ],
        out_specs=pl.BlockSpec((M_blk, Cout), lambda i: (i, 0)),
        scratch_shapes=[
            pltpu.VMEM((batch_block, H + 2, W + 2, Cmid), compute_dtype),
            pltpu.VMEM((M_blk, 9 * Cmid), compute_dtype),
        ],
        compiler_params=pltpu.CompilerParams(
            dimension_semantics=("parallel",)),
    )(x2d, w1s, t1, w2s, t2, w3s, t3)

    out_nhwc = out2d.reshape(N, H, W, Cout)
    return jnp.transpose(out_nhwc, (0, 3, 1, 2))


# ---------------------------------------------------------------------------
# Plain-JAX reference (same math, for validation)
# ---------------------------------------------------------------------------
def reference_forward(x_nchw, params):
    x = jnp.transpose(x_nchw, (0, 2, 3, 1)).astype(jnp.float32)
    s1, t1 = _fold_bn(params["b1"], params["g1"], params["be1"],
                      params["rm1"], params["rv1"])
    s2, t2 = _fold_bn(params["b2"], params["g2"], params["be2"],
                      params["rm2"], params["rv2"])
    s3, t3 = _fold_bn(params["b3"], params["g3"], params["be3"],
                      params["rm3"], params["rv3"])
    h = jnp.maximum(jnp.einsum("nhwc,cd->nhwd", x, params["w1"]) * s1 + t1, 0.0)
    hp = jnp.pad(h, ((0, 0), (1, 1), (1, 1), (0, 0)))
    N, H, W, _ = h.shape
    Cout2 = params["w2"].shape[3]
    acc = jnp.zeros((N, H, W, Cout2), jnp.float32)
    for kh in range(3):
        for kw in range(3):
            acc = acc + jnp.einsum("nhwc,cd->nhwd",
                                   hp[:, kh:kh + H, kw:kw + W, :],
                                   params["w2"][kh, kw])
    h = jnp.maximum(acc * s2 + t2, 0.0)
    h = jnp.einsum("nhwc,cd->nhwd", h, params["w3"]) * s3 + t3
    out = jnp.maximum(h + x, 0.0)
    return jnp.transpose(out, (0, 3, 1, 2))


# ---------------------------------------------------------------------------
# Main
# ---------------------------------------------------------------------------
if __name__ == "__main__":
    key = jax.random.PRNGKey(0)
    N, Cin, H, W = 2, 16, 8, 8
    Cmid = 4                       # out_channels
    Cout = Cmid * 4                # expansion = 4 ; equals Cin -> identity add ok

    ks = jax.random.split(key, 20)
    params = {
        # conv1: 1x1 (Cin -> Cmid) stored as (Cin, Cmid) matmul weight
        "w1": jax.random.normal(ks[0], (Cin, Cmid), jnp.float32) * 0.2,
        "b1": jax.random.normal(ks[1], (Cmid,), jnp.float32) * 0.1,
        "g1": 1.0 + 0.1 * jax.random.normal(ks[2], (Cmid,), jnp.float32),
        "be1": 0.1 * jax.random.normal(ks[3], (Cmid,), jnp.float32),
        "rm1": 0.1 * jax.random.normal(ks[4], (Cmid,), jnp.float32),
        "rv1": 0.5 + jax.nn.softplus(jax.random.normal(ks[5], (Cmid,), jnp.float32)),
        # conv2: 3x3 (Cmid -> Cmid) stored HWIO
        "w2": jax.random.normal(ks[6], (3, 3, Cmid, Cmid), jnp.float32) * 0.2,
        "b2": jax.random.normal(ks[7], (Cmid,), jnp.float32) * 0.1,
        "g2": 1.0 + 0.1 * jax.random.normal(ks[8], (Cmid,), jnp.float32),
        "be2": 0.1 * jax.random.normal(ks[9], (Cmid,), jnp.float32),
        "rm2": 0.1 * jax.random.normal(ks[10], (Cmid,), jnp.float32),
        "rv2": 0.5 + jax.nn.softplus(jax.random.normal(ks[11], (Cmid,), jnp.float32)),
        # conv3: 1x1 (Cmid -> Cout) stored as (Cmid, Cout) matmul weight
        "w3": jax.random.normal(ks[12], (Cmid, Cout), jnp.float32) * 0.2,
        "b3": jax.random.normal(ks[13], (Cout,), jnp.float32) * 0.1,
        "g3": 1.0 + 0.1 * jax.random.normal(ks[14], (Cout,), jnp.float32),
        "be3": 0.1 * jax.random.normal(ks[15], (Cout,), jnp.float32),
        "rm3": 0.1 * jax.random.normal(ks[16], (Cout,), jnp.float32),
        "rv3": 0.5 + jax.nn.softplus(jax.random.normal(ks[17], (Cout,), jnp.float32)),
    }

    x = jax.random.normal(ks[18], (N, Cin, H, W), jnp.float32)

    out = bottleneck_forward(x, params)            # f32 MXU operands (exact check)
    out = jax.block_until_ready(out)

    ref = jax.block_until_ready(reference_forward(x, params))
    assert out.shape == (N, Cout, H, W)
    assert jnp.allclose(out, ref, atol=1e-4, rtol=1e-4), "mismatch vs reference"

    # bf16 MXU-operand path (v6e/v7x); f32 accumulation + f32 elementwise.
    out_bf16 = jax.block_until_ready(
        bottleneck_forward(x, params, compute_dtype=jnp.bfloat16))
    assert jnp.allclose(out_bf16, ref, atol=5e-2, rtol=5e-2), "bf16 path off"

    print("KERNEL_OK")
</pallas_src>

<mosaic_0001>
module attributes {stable_mosaic.version = 11 : i64} {
  func.func @_bottleneck_fused_kernel(%arg0: i32, %arg1: memref<128x16xf32, #tpu.memory_space<vmem>>, %arg2: memref<16x4xf32, #tpu.memory_space<vmem>>, %arg3: memref<1x4xf32, #tpu.memory_space<vmem>>, %arg4: memref<36x4xf32, #tpu.memory_space<vmem>>, %arg5: memref<1x4xf32, #tpu.memory_space<vmem>>, %arg6: memref<4x16xf32, #tpu.memory_space<vmem>>, %arg7: memref<1x16xf32, #tpu.memory_space<vmem>>, %arg8: memref<128x16xf32, #tpu.memory_space<vmem>>, %arg9: memref<2x10x10x4xf32, #tpu.memory_space<vmem>>, %arg10: memref<128x36xf32, #tpu.memory_space<vmem>>) attributes {dimension_semantics = [#tpu.dimension_semantics<parallel>], iteration_bounds = array<i64: 1>, scalar_prefetch = 0 : i64, scratch_operands = 2 : i64, tpu.core_type = #tpu.core_type<tc>, window_params = [{transform_indices = @transform_0, window_bounds = array<i64: 128, 16>}, {pipeline_mode = #tpu.pipeline_mode<synchronous>, transform_indices = @transform_1, window_bounds = array<i64: 16, 4>}, {pipeline_mode = #tpu.pipeline_mode<synchronous>, transform_indices = @transform_2, window_bounds = array<i64: 1, 4>}, {pipeline_mode = #tpu.pipeline_mode<synchronous>, transform_indices = @transform_3, window_bounds = array<i64: 36, 4>}, {pipeline_mode = #tpu.pipeline_mode<synchronous>, transform_indices = @transform_4, window_bounds = array<i64: 1, 4>}, {pipeline_mode = #tpu.pipeline_mode<synchronous>, transform_indices = @transform_5, window_bounds = array<i64: 4, 16>}, {pipeline_mode = #tpu.pipeline_mode<synchronous>, transform_indices = @transform_6, window_bounds = array<i64: 1, 16>}, {transform_indices = @transform_7, window_bounds = array<i64: 128, 16>}]} {
    %c0 = arith.constant 0 : index
    %c0_0 = arith.constant 0 : index
    %0 = vector.load %arg1[%c0, %c0_0] : memref<128x16xf32, #tpu.memory_space<vmem>>, vector<128x16xf32>
    %c0_1 = arith.constant 0 : index
    %c0_2 = arith.constant 0 : index
    %1 = vector.load %arg2[%c0_1, %c0_2] : memref<16x4xf32, #tpu.memory_space<vmem>>, vector<16x4xf32>
    %cst = arith.constant dense<0.000000e+00> : vector<128x4xf32>
    %2 = tpu.matmul %0, %1, %cst {dimension_numbers = #tpu.dot_dimension_numbers<[1], [0], [0], [1], [0, 0, 1, 1], [], []>} : vector<128x16xf32>, vector<16x4xf32>, vector<128x4xf32> -> vector<128x4xf32>
    %c0_3 = arith.constant 0 : index
    %c0_4 = arith.constant 0 : index
    %3 = vector.load %arg3[%c0_3, %c0_4] : memref<1x4xf32, #tpu.memory_space<vmem>>, vector<1x4xf32>
    %4 = vector.broadcast %3 : vector<1x4xf32> to vector<128x4xf32>
    %5 = arith.addf %2, %4 : vector<128x4xf32>
    %cst_5 = arith.constant 0.000000e+00 : f32
    %6 = vector.broadcast %cst_5 : f32 to vector<128x4xf32>
    %7 = arith.maximumf %5, %6 : vector<128x4xf32>
    %cst_6 = arith.constant 0.000000e+00 : f32
    %8 = vector.broadcast %cst_6 : f32 to vector<2x10x10x4xf32>
    %c0_7 = arith.constant 0 : index
    %c0_8 = arith.constant 0 : index
    %c0_9 = arith.constant 0 : index
    %c0_10 = arith.constant 0 : index
    %9 = vector.load %arg9[%c0_7, %c0_8, %c0_9, %c0_10] : memref<2x10x10x4xf32, #tpu.memory_space<vmem>>, vector<2x10x10x4xf32>
    tpu.vector_store %arg9[%c0_7, %c0_8, %c0_9, %c0_10], %8 {strides = array<i32>} : memref<2x10x10x4xf32, #tpu.memory_space<vmem>>, vector<2x10x10x4xf32>,
    %10 = vector.shape_cast %7 : vector<128x4xf32> to vector<2x8x8x4xf32>
    %c0_11 = arith.constant 0 : index
    %c1 = arith.constant 1 : index
    %c1_12 = arith.constant 1 : index
    %c0_13 = arith.constant 0 : index
    %11 = vector.load %arg9[%c0_11, %c1, %c1_12, %c0_13] : memref<2x10x10x4xf32, #tpu.memory_space<vmem>>, vector<2x8x8x4xf32>
    tpu.vector_store %arg9[%c0_11, %c1, %c1_12, %c0_13], %10 {strides = array<i32>} : memref<2x10x10x4xf32, #tpu.memory_space<vmem>>, vector<2x8x8x4xf32>,
    %c0_14 = arith.constant 0 : index
    %c0_15 = arith.constant 0 : index
    %c0_16 = arith.constant 0 : index
    %c0_17 = arith.constant 0 : index
    %12 = vector.load %arg9[%c0_14, %c0_15, %c0_16, %c0_17] : memref<2x10x10x4xf32, #tpu.memory_space<vmem>>, vector<2x10x10x4xf32>
    %13 = vector.extract_strided_slice %12 {offsets = [0, 0, 0, 0], sizes = [2, 8, 8, 4], strides = [1, 1, 1, 1]} : vector<2x10x10x4xf32> to vector<2x8x8x4xf32>
    %14 = vector.shape_cast %13 : vector<2x8x8x4xf32> to vector<128x4xf32>
    %c0_18 = arith.constant 0 : index
    %c0_19 = arith.constant 0 : index
    %15 = vector.load %arg10[%c0_18, %c0_19] : memref<128x36xf32, #tpu.memory_space<vmem>>, vector<128x4xf32>
    tpu.vector_store %arg10[%c0_18, %c0_19], %14 {strides = array<i32>} : memref<128x36xf32, #tpu.memory_space<vmem>>, vector<128x4xf32>,
    %16 = vector.extract_strided_slice %12 {offsets = [0, 0, 1, 0], sizes = [2, 8, 8, 4], strides = [1, 1, 1, 1]} : vector<2x10x10x4xf32> to vector<2x8x8x4xf32>
    %17 = vector.shape_cast %16 : vector<2x8x8x4xf32> to vector<128x4xf32>
    %c0_20 = arith.constant 0 : index
    %c4 = arith.constant 4 : index
    %18 = vector.load %arg10[%c0_20, %c4] : memref<128x36xf32, #tpu.memory_space<vmem>>, vector<128x4xf32>
    tpu.vector_store %arg10[%c0_20, %c4], %17 {strides = array<i32>} : memref<128x36xf32, #tpu.memory_space<vmem>>, vector<128x4xf32>,
    %19 = vector.extract_strided_slice %12 {offsets = [0, 0, 2, 0], sizes = [2, 8, 8, 4], strides = [1, 1, 1, 1]} : vector<2x10x10x4xf32> to vector<2x8x8x4xf32>
    %20 = vector.shape_cast %19 : vector<2x8x8x4xf32> to vector<128x4xf32>
    %c0_21 = arith.constant 0 : index
    %c8 = arith.constant 8 : index
    %21 = vector.load %arg10[%c0_21, %c8] : memref<128x36xf32, #tpu.memory_space<vmem>>, vector<128x4xf32>
    tpu.vector_store %arg10[%c0_21, %c8], %20 {strides = array<i32>} : memref<128x36xf32, #tpu.memory_space<vmem>>, vector<128x4xf32>,
    %22 = vector.extract_strided_slice %12 {offsets = [0, 1, 0, 0], sizes = [2, 8, 8, 4], strides = [1, 1, 1, 1]} : vector<2x10x10x4xf32> to vector<2x8x8x4xf32>
    %23 = vector.shape_cast %22 : vector<2x8x8x4xf32> to vector<128x4xf32>
    %c0_22 = arith.constant 0 : index
    %c12 = arith.constant 12 : index
    %24 = vector.load %arg10[%c0_22, %c12] : memref<128x36xf32, #tpu.memory_space<vmem>>, vector<128x4xf32>
    tpu.vector_store %arg10[%c0_22, %c12], %23 {strides = array<i32>} : memref<128x36xf32, #tpu.memory_space<vmem>>, vector<128x4xf32>,
    %25 = vector.extract_strided_slice %12 {offsets = [0, 1, 1, 0], sizes = [2, 8, 8, 4], strides = [1, 1, 1, 1]} : vector<2x10x10x4xf32> to vector<2x8x8x4xf32>
    %26 = vector.shape_cast %25 : vector<2x8x8x4xf32> to vector<128x4xf32>
    %c0_23 = arith.constant 0 : index
    %c16 = arith.constant 16 : index
    %27 = vector.load %arg10[%c0_23, %c16] : memref<128x36xf32, #tpu.memory_space<vmem>>, vector<128x4xf32>
    tpu.vector_store %arg10[%c0_23, %c16], %26 {strides = array<i32>} : memref<128x36xf32, #tpu.memory_space<vmem>>, vector<128x4xf32>,
    %28 = vector.extract_strided_slice %12 {offsets = [0, 1, 2, 0], sizes = [2, 8, 8, 4], strides = [1, 1, 1, 1]} : vector<2x10x10x4xf32> to vector<2x8x8x4xf32>
    %29 = vector.shape_cast %28 : vector<2x8x8x4xf32> to vector<128x4xf32>
    %c0_24 = arith.constant 0 : index
    %c20 = arith.constant 20 : index
    %30 = vector.load %arg10[%c0_24, %c20] : memref<128x36xf32, #tpu.memory_space<vmem>>, vector<128x4xf32>
    tpu.vector_store %arg10[%c0_24, %c20], %29 {strides = array<i32>} : memref<128x36xf32, #tpu.memory_space<vmem>>, vector<128x4xf32>,
    %31 = vector.extract_strided_slice %12 {offsets = [0, 2, 0, 0], sizes = [2, 8, 8, 4], strides = [1, 1, 1, 1]} : vector<2x10x10x4xf32> to vector<2x8x8x4xf32>
    %32 = vector.shape_cast %31 : vector<2x8x8x4xf32> to vector<128x4xf32>
    %c0_25 = arith.constant 0 : index
    %c24 = arith.constant 24 : index
    %33 = vector.load %arg10[%c0_25, %c24] : memref<128x36xf32, #tpu.memory_space<vmem>>, vector<128x4xf32>
    tpu.vector_store %arg10[%c0_25, %c24], %32 {strides = array<i32>} : memref<128x36xf32, #tpu.memory_space<vmem>>, vector<128x4xf32>,
    %34 = vector.extract_strided_slice %12 {offsets = [0, 2, 1, 0], sizes = [2, 8, 8, 4], strides = [1, 1, 1, 1]} : vector<2x10x10x4xf32> to vector<2x8x8x4xf32>
    %35 = vector.shape_cast %34 : vector<2x8x8x4xf32> to vector<128x4xf32>
    %c0_26 = arith.constant 0 : index
    %c28 = arith.constant 28 : index
    %36 = vector.load %arg10[%c0_26, %c28] : memref<128x36xf32, #tpu.memory_space<vmem>>, vector<128x4xf32>
    tpu.vector_store %arg10[%c0_26, %c28], %35 {strides = array<i32>} : memref<128x36xf32, #tpu.memory_space<vmem>>, vector<128x4xf32>,
    %37 = vector.extract_strided_slice %12 {offsets = [0, 2, 2, 0], sizes = [2, 8, 8, 4], strides = [1, 1, 1, 1]} : vector<2x10x10x4xf32> to vector<2x8x8x4xf32>
    %38 = vector.shape_cast %37 : vector<2x8x8x4xf32> to vector<128x4xf32>
    %c0_27 = arith.constant 0 : index
    %c32 = arith.constant 32 : index
    %39 = vector.load %arg10[%c0_27, %c32] : memref<128x36xf32, #tpu.memory_space<vmem>>, vector<128x4xf32>
    tpu.vector_store %arg10[%c0_27, %c32], %38 {strides = array<i32>} : memref<128x36xf32, #tpu.memory_space<vmem>>, vector<128x4xf32>,
    %c0_28 = arith.constant 0 : index
    %c0_29 = arith.constant 0 : index
    %40 = vector.load %arg10[%c0_28, %c0_29] : memref<128x36xf32, #tpu.memory_space<vmem>>, vector<128x36xf32>
    %c0_30 = arith.constant 0 : index
    %c0_31 = arith.constant 0 : index
    %41 = vector.load %arg4[%c0_30, %c0_31] : memref<36x4xf32, #tpu.memory_space<vmem>>, vector<36x4xf32>
    %cst_32 = arith.constant dense<0.000000e+00> : vector<128x4xf32>
    %42 = tpu.matmul %40, %41, %cst_32 {dimension_numbers = #tpu.dot_dimension_numbers<[1], [0], [0], [1], [0, 0, 1, 1], [], []>} : vector<128x36xf32>, vector<36x4xf32>, vector<128x4xf32> -> vector<128x4xf32>
    %c0_33 = arith.constant 0 : index
    %c0_34 = arith.constant 0 : index
    %43 = vector.load %arg5[%c0_33, %c0_34] : memref<1x4xf32, #tpu.memory_space<vmem>>, vector<1x4xf32>
    %44 = vector.broadcast %43 : vector<1x4xf32> to vector<128x4xf32>
    %45 = arith.addf %42, %44 : vector<128x4xf32>
    %cst_35 = arith.constant 0.000000e+00 : f32
    %46 = vector.broadcast %cst_35 : f32 to vector<128x4xf32>
    %47 = arith.maximumf %45, %46 : vector<128x4xf32>
    %c0_36 = arith.constant 0 : index
    %c0_37 = arith.constant 0 : index
    %48 = vector.load %arg6[%c0_36, %c0_37] : memref<4x16xf32, #tpu.memory_space<vmem>>, vector<4x16xf32>
    %cst_38 = arith.constant dense<0.000000e+00> : vector<128x16xf32>
    %49 = tpu.matmul %47, %48, %cst_38 {dimension_numbers = #tpu.dot_dimension_numbers<[1], [0], [0], [1], [0, 0, 1, 1], [], []>} : vector<128x4xf32>, vector<4x16xf32>, vector<128x16xf32> -> vector<128x16xf32>
    %c0_39 = arith.constant 0 : index
    %c0_40 = arith.constant 0 : index
    %50 = vector.load %arg7[%c0_39, %c0_40] : memref<1x16xf32, #tpu.memory_space<vmem>>, vector<1x16xf32>
    %51 = vector.broadcast %50 : vector<1x16xf32> to vector<128x16xf32>
    %52 = arith.addf %49, %51 : vector<128x16xf32>
    %53 = arith.addf %52, %0 : vector<128x16xf32>
    %cst_41 = arith.constant 0.000000e+00 : f32
    %54 = vector.broadcast %cst_41 : f32 to vector<128x16xf32>
    %55 = arith.maximumf %53, %54 : vector<128x16xf32>
    %c0_42 = arith.constant 0 : index
    %c0_43 = arith.constant 0 : index
    %56 = vector.load %arg8[%c0_42, %c0_43] : memref<128x16xf32, #tpu.memory_space<vmem>>, vector<128x16xf32>
    tpu.vector_store %arg8[%c0_42, %c0_43], %55 {strides = array<i32>} : memref<128x16xf32, #tpu.memory_space<vmem>>, vector<128x16xf32>,
    return
  }
  func.func @transform_0(%arg0: i32) -> (i32, i32) {
    %c0_i32 = arith.constant 0 : i32
    %c0_i32_0 = arith.constant 0 : i32
    return %arg0, %c0_i32 : i32, i32
  }
  func.func @transform_1(%arg0: i32) -> (i32, i32) {
    %c0_i32 = arith.constant 0 : i32
    %c0_i32_0 = arith.constant 0 : i32
    %c0_i32_1 = arith.constant 0 : i32
    return %c0_i32, %c0_i32_0 : i32, i32
  }
  func.func @transform_2(%arg0: i32) -> (i32, i32) {
    %c0_i32 = arith.constant 0 : i32
    %c0_i32_0 = arith.constant 0 : i32
    %c0_i32_1 = arith.constant 0 : i32
    return %c0_i32, %c0_i32_0 : i32, i32
  }
  func.func @transform_3(%arg0: i32) -> (i32, i32) {
    %c0_i32 = arith.constant 0 : i32
    %c0_i32_0 = arith.constant 0 : i32
    %c0_i32_1 = arith.constant 0 : i32
    return %c0_i32, %c0_i32_0 : i32, i32
  }
  func.func @transform_4(%arg0: i32) -> (i32, i32) {
    %c0_i32 = arith.constant 0 : i32
    %c0_i32_0 = arith.constant 0 : i32
    %c0_i32_1 = arith.constant 0 : i32
    return %c0_i32, %c0_i32_0 : i32, i32
  }
  func.func @transform_5(%arg0: i32) -> (i32, i32) {
    %c0_i32 = arith.constant 0 : i32
    %c0_i32_0 = arith.constant 0 : i32
    %c0_i32_1 = arith.constant 0 : i32
    return %c0_i32, %c0_i32_0 : i32, i32
  }
  func.func @transform_6(%arg0: i32) -> (i32, i32) {
    %c0_i32 = arith.constant 0 : i32
    %c0_i32_0 = arith.constant 0 : i32
    %c0_i32_1 = arith.constant 0 : i32
    return %c0_i32, %c0_i32_0 : i32, i32
  }
  func.func @transform_7(%arg0: i32) -> (i32, i32) {
    %c0_i32 = arith.constant 0 : i32
    %c0_i32_0 = arith.constant 0 : i32
    return %arg0, %c0_i32 : i32, i32
  }
}

</mosaic_0001>

<bundles_post_ra>
// kernel: tpu_custom_call.1
= control target key start
LH: loop header
LB: loop body
LE: loop exit
PB: predicated region body
PF: predicated region fallthrough
CT: control target
= control target key end

     0   :  { %vm51_vm0 = vcmask 130048   ;;  %vm261_vm1 = vcmask 31744   ;;  %vm263_vm2 = vcmask 25600   ;;  %v1792_v3 = vmov 0.0   ;;  %s1793_s24 = smov 24   ;;  %s1794_s9 = smov 4   ;;  %s2668_s1 = inlined_call_operand.vmem [shape: f32[16,4], index: 1, kind: input, shape index: {}]   ;;  %s2669_s0 = inlined_call_operand.vmem [shape: f32[128,16], index: 0, kind: input, shape index: {}]   ;;  %s2670_s2 = inlined_call_operand.vmem [shape: f32[1,4], index: 2, kind: input, shape index: {}]   ;;  %s2671_s3 = inlined_call_operand.vmem [shape: f32[36,4], index: 3, kind: input, shape index: {}]   ;;  %s2672_s5 = inlined_call_operand.vmem [shape: f32[4,16], index: 5, kind: input, shape index: {}]   ;;  %s2673_s4 = inlined_call_operand.vmem [shape: f32[1,4], index: 4, kind: input, shape index: {}]   ;;  %s2674_s6 = inlined_call_operand.vmem [shape: f32[1,16], index: 6, kind: input, shape index: {}]   ;;  %s2675_s7 = inlined_call_operand.vmem [shape: f32[128,16], index: 7, kind: output, shape index: {}]  }
   0x1   :  { %v42_v0 = vld [vmem:[%s2668_s1] sm:$0xff]  ;;  %v43_v1 = vld [vmem:[%s2668_s1 + $0x8] sm:$0xff]  ;;  %281 = vst.msk [vmem:[#allocation2 + $0x90] sm:$0xff] %vm261_vm1, %v1792_v3  ;;  %262 = vst.msk [vmem:[#allocation2] sm:$0xff] %vm261_vm1, %v1792_v3  ;;  %vm408_vm3 = vcmask 1046528   ;;  %vm522_vm4 = vcmask 1045504  }
   0x2   :  { %v26_v2 = vld [vmem:[%s2669_s0] sm:$0xff]  ;;  %265 = vst.msk [vmem:[#allocation2 + $0x10] sm:$0xff] %vm261_vm1, %v1792_v3  ;;  %267 = vst.msk [vmem:[#allocation2 + $0x20] sm:$0xff] %vm261_vm1, %v1792_v3  ;;  %v1753_v4 = vpack.c.bf16 %v43_v1, %v42_v0  ;;  %v27_v6 = vld [vmem:[%s2669_s0 + $0x8] sm:$0xff]  ;;  %s1795_s14 = smov 8   ;;  %s1796_s15 = smov 32  }
   0x3   :  { %269 = vst.msk [vmem:[#allocation2 + $0x30] sm:$0xff] %vm261_vm1, %v1792_v3  ;;  %271 = vst.msk [vmem:[#allocation2 + $0x40] sm:$0xff] %vm261_vm1, %v1792_v3  ;;  %1669 = vmatprep.mubr.msk.f32.mxu0 %vm51_vm0, %v26_v2  ;;  %v34_v5 = vld [vmem:[%s2669_s0 + $0x40] sm:$0xff]  ;;  %v35_v7 = vld [vmem:[%s2669_s0 + $0x48] sm:$0xff]  ;;  %s1797_s16 = smov 28   ;;  %vm505_vm5 = vcmask 64544  }
   0x4   :  { %273 = vst.msk [vmem:[#allocation2 + $0x50] sm:$0xff] %vm261_vm1, %v1792_v3  ;;  %275 = vst.msk [vmem:[#allocation2 + $0x60] sm:$0xff] %vm261_vm1, %v1792_v3  ;;  %1681 = vmatprep.mubr.msk.f32.mxu1 %vm51_vm0, %v34_v5  ;;  %1754 = vmatprep.subr.bf16.mxu0 %v1753_v4  ;;  %v28_v8 = vld [vmem:[%s2669_s0 + $0x10] sm:$0xff]  ;;  %v29_v13 = vld [vmem:[%s2669_s0 + $0x18] sm:$0xff]  ;;  %vm619_vm6 = vcmask 97344   ;;  %s1799_s19 = smov 16  }
   0x5   :  { %277 = vst.msk [vmem:[#allocation2 + $0x70] sm:$0xff] %vm261_vm1, %v1792_v3  ;;  %279 = vst.msk [vmem:[#allocation2 + $0x80] sm:$0xff] %vm261_vm1, %v1792_v3  ;;  %1765 = vmatprep.subr.bf16.mxu1 %v1753_v4  ;;  %1756 = vmatpush3.bf16.msra.mxu0 %v1753_v4  ;;  %v36_v9 = vld [vmem:[%s2669_s0 + $0x50] sm:$0xff]  ;;  %v37_v14 = vld [vmem:[%s2669_s0 + $0x58] sm:$0xff]  ;;  %s1800_s20 = smov 20   ;;  %vm1135_vm7 = vcmask 1043456  }
   0x6   :  { %283 = vst.msk [vmem:[#allocation2 + $0xa0] sm:$0xff] %vm261_vm1, %v1792_v3  ;;  %285 = vst.msk [vmem:[#allocation2 + $0xb0] sm:$0xff] %vm261_vm1, %v1792_v3  ;;  %1766 = vmatpush3.bf16.msra.mxu1 %v1753_v4  ;;  %v30_v17 = vld [vmem:[%s2669_s0 + $0x20] sm:$0xff]  ;;  %v31_v20 = vld [vmem:[%s2669_s0 + $0x28] sm:$0xff]  ;;  %vm686_vm8 = vcmask 130144   ;;  %vm759_vm9 = vcmask 162944  }
   0x7   :  { %287 = vst.msk [vmem:[#allocation2 + $0xc0] sm:$0xff] %vm261_vm1, %v1792_v3  ;;  %289 = vst.msk [vmem:[#allocation2 + $0xd0] sm:$0xff] %vm261_vm1, %v1792_v3  ;;  %v38_v18 = vld [vmem:[%s2669_s0 + $0x60] sm:$0xff]  ;;  %v39_v21 = vld [vmem:[%s2669_s0 + $0x68] sm:$0xff]  ;;  %vm830_vm10 = vcmask 195744   ;;  %vm897_vm11 = vcmask 228544  }
   0x8   :  { %291 = vst.msk [vmem:[#allocation2 + $0xe0] sm:$0xff] %vm261_vm1, %v1792_v3  ;;  %293 = vst.msk [vmem:[#allocation2 + $0xf0] sm:$0xff] %vm261_vm1, %v1792_v3  ;;  %1670 = vmatmul.mubr.msk.f32.vlgmr.msra.gmra.mrb[0].mxu0 %vm51_vm0, %v27_v6  ;;  %v338_v10 = vld [vmem:[#allocation2 + $0x90] sm:$0xff]  ;;  %v320_v11 = vld [vmem:[#allocation2] sm:$0xff]  ;;  %vm970_vm12 = vcmask 261344   ;;  %vm1041_vm13 = vcmask 294144  }
   0x9   :  { %295 = vst.msk [vmem:[#allocation2 + $0x100] sm:$0xff] %vm261_vm1, %v1792_v3  ;;  %297 = vst.msk [vmem:[#allocation2 + $0x110] sm:$0xff] %vm261_vm1, %v1792_v3  ;;  %1682 = vmatmul.mubr.msk.f32.vlgmr.msra.gmra.mrb[0].mxu1 %vm51_vm0, %v35_v7  ;;  %1672 = vmatprep.mubr.msk.f32.mxu0 %vm51_vm0, %v28_v8  ;;  %v409_v15 = vrot.slane %v320_v11, 1  ;;  %v32_v22 = vld [vmem:[%s2669_s0 + $0x30] sm:$0xff]  ;;  %v33_v24 = vld [vmem:[%s2669_s0 + $0x38] sm:$0xff]  ;;  %v523_v26 = vrot.slane %v320_v11, 2 }
   0xa   :  { %299 = vst.msk [vmem:[#allocation2 + $0x120] sm:$0xff] %vm261_vm1, %v1792_v3  ;;  %301 = vst.msk [vmem:[#allocation2 + $0x130] sm:$0xff] %vm261_vm1, %v1792_v3  ;;  %1684 = vmatprep.mubr.msk.f32.mxu1 %vm51_vm0, %v36_v9  ;;  %863 = vrot.lane.b32.xlu0 %v338_v10, %s1793_s24  ;;  %v40_v23 = vld [vmem:[%s2669_s0 + $0x70] sm:$0xff]  ;;  %v41_v25 = vld [vmem:[%s2669_s0 + $0x78] sm:$0xff]  ;;  %v916_v36 = vrot.slane %v338_v10, 1  ;;  %v987_v37 = vrot.slane %v338_v10, 2 }
   0xb   :  { %264 = vst.msk [vmem:[#allocation2 + $0x8] sm:$0x3] %vm263_vm2, %v1792_v3  ;;  %266 = vst.msk [vmem:[#allocation2 + $0x18] sm:$0x3] %vm263_vm2, %v1792_v3  ;;  %v1975_v49 = vld [vmem:[%s2670_s2] ss:$0 sm:$0xff] }
   0xc   :  { %268 = vst.msk [vmem:[#allocation2 + $0x28] sm:$0x3] %vm263_vm2, %v1792_v3  ;;  %270 = vst.msk [vmem:[#allocation2 + $0x38] sm:$0x3] %vm263_vm2, %v1792_v3  ;;  %1673 = vmatmul.mubr.msk.f32.gmra.mrb[2].mxu0 %vm51_vm0, %v29_v13  ;;  %s1798_s2 = smov 12   ;;  %vm1086_vm14 = vcmask 293888  }
   0xd   :  { %272 = vst.msk [vmem:[#allocation2 + $0x48] sm:$0x3] %vm263_vm2, %v1792_v3  ;;  %274 = vst.msk [vmem:[#allocation2 + $0x58] sm:$0x3] %vm263_vm2, %v1792_v3  ;;  %1685 = vmatmul.mubr.msk.f32.gmra.mrb[2].mxu1 %vm51_vm0, %v37_v14  ;;  %1675 = vmatprep.mubr.msk.f32.mxu0 %vm51_vm0, %v30_v17  ;;  %v340_v29 = vld [vmem:[#allocation2 + $0xa0] sm:$0xff] }
   0xe   :  { %276 = vst.msk [vmem:[#allocation2 + $0x68] sm:$0x3] %vm263_vm2, %v1792_v3  ;;  %278 = vst.msk [vmem:[#allocation2 + $0x78] sm:$0x3] %vm263_vm2, %v1792_v3  ;;  %1687 = vmatprep.mubr.msk.f32.mxu1 %vm51_vm0, %v38_v18  ;;  %v433_v31 = vrot.slane %v340_v29, 1  ;;  %v547_v33 = vrot.slane %v340_v29, 2 }
   0xf   :  { %280 = vst.msk [vmem:[#allocation2 + $0x88] sm:$0x3] %vm263_vm2, %v1792_v3  ;;  %282 = vst.msk [vmem:[#allocation2 + $0x98] sm:$0x3] %vm263_vm2, %v1792_v3 }
  0x10   :  { %284 = vst.msk [vmem:[#allocation2 + $0xa8] sm:$0x3] %vm263_vm2, %v1792_v3  ;;  %286 = vst.msk [vmem:[#allocation2 + $0xb8] sm:$0x3] %vm263_vm2, %v1792_v3  ;;  %1676 = vmatmul.mubr.msk.f32.gmra.mrb[4].mxu0 %vm51_vm0, %v31_v20 }
  0x11   :  { %288 = vst.msk [vmem:[#allocation2 + $0xc8] sm:$0x3] %vm263_vm2, %v1792_v3  ;;  %290 = vst.msk [vmem:[#allocation2 + $0xd8] sm:$0x3] %vm263_vm2, %v1792_v3  ;;  %1688 = vmatmul.mubr.msk.f32.gmra.mrb[4].mxu1 %vm51_vm0, %v39_v21  ;;  %1678 = vmatprep.mubr.msk.f32.mxu0 %vm51_vm0, %v32_v22 }
  0x12   :  { %292 = vst.msk [vmem:[#allocation2 + $0xe8] sm:$0x3] %vm263_vm2, %v1792_v3  ;;  %294 = vst.msk [vmem:[#allocation2 + $0xf8] sm:$0x3] %vm263_vm2, %v1792_v3  ;;  %v321_v12 = vld [vmem:[#allocation2 + $0x8] sm:$0x3]  ;;  %1690 = vmatprep.mubr.msk.f32.mxu1 %vm51_vm0, %v40_v23 }
  0x13   :  { %296 = vst.msk [vmem:[#allocation2 + $0x108] sm:$0x3] %vm263_vm2, %v1792_v3  ;;  %298 = vst.msk [vmem:[#allocation2 + $0x118] sm:$0x3] %vm263_vm2, %v1792_v3  ;;  %v410_v16 = vrot.slane %v321_v12, 1  ;;  %v524_v27 = vrot.slane %v321_v12, 2 }
  0x14   :  { %300 = vst.msk [vmem:[#allocation2 + $0x128] sm:$0x3] %vm263_vm2, %v1792_v3  ;;  %302 = vst.msk [vmem:[#allocation2 + $0x138] sm:$0x3] %vm263_vm2, %v1792_v3  ;;  %1679 = vmatmul.mubr.msk.f32.gmra.mrb[6].mxu0 %vm51_vm0, %v33_v24 }
  0x15   :  { %360 = vst.msk [vmem:[#allocation3] sm:$0xff] %vm261_vm1, %v320_v11  ;;  %v411_v19 = vsel %vm408_vm3, %v409_v15, %v410_v16  ;;  %1691 = vmatmul.mubr.msk.f32.gmra.mrb[6].mxu1 %vm51_vm0, %v41_v25  ;;  %v525_v28 = vsel %vm522_vm4, %v523_v26, %v524_v27  ;;  %368 = vst.msk [vmem:[#allocation3 + $0x40] sm:$0xff] %vm261_vm1, %v340_v29 }
  0x16   :  { %457 = vrot.lane.b32.xlu0 %v411_v19, %s1794_s9  ;;  %571 = vrot.lane.b32.xlu1 %v525_v28, %s1795_s14  ;;  %v339_v39 = vld [vmem:[#allocation2 + $0x98] sm:$0x3] }
  0x17   :  { %v341_v30 = vld [vmem:[#allocation2 + $0xa8] sm:$0x3]  ;;  %v988_v40 = vrot.slane %v339_v39, 2  ;;  %v917_v41 = vrot.slane %v339_v39, 1 }
  0x18   :  { %v434_v32 = vrot.slane %v341_v30, 1  ;;  %v548_v34 = vrot.slane %v341_v30, 2 }
  0x19   :  { %v989_v42 = vsel %vm522_vm4, %v987_v37, %v988_v40  ;;  %v918_v43 = vsel %vm408_vm3, %v916_v36, %v917_v41 }
  0x1a   :  { %v435_v35 = vsel %vm408_vm3, %v433_v31, %v434_v32  ;;  %v549_v38 = vsel %vm522_vm4, %v547_v33, %v548_v34 }
  0x1b   :  { %473 = vrot.lane.b32.xlu0 %v435_v35, %s1794_s9  ;;  %587 = vrot.lane.b32.xlu1 %v549_v38, %s1795_s14 }
  0x1f   :  { %1007 = vrot.lane.b32.xlu1 %v989_v42, %s1796_s15  ;;  %936 = vrot.lane.b32.xlu0 %v918_v43, %s1797_s16 }
  0x7c   :  { %v1966_v44 = vpop.permute.xlu0 %863 }
  0x88   :  { %v458_v45 = vpop.permute.xlu0 %457  ;;  %v572_v46 = vpop.permute.xlu1 %571 }
  0x89   :  { %506 = vst.msk [vmem:[#allocation3] sm:$0xff] %vm505_vm5, %v458_v45 }
  0x8a   :  { %620 = vst.msk [vmem:[#allocation3] sm:$0xff] %vm619_vm6, %v572_v46 }
  0x8d   :  { %v474_v47 = vpop.permute.xlu0 %473  ;;  %v588_v48 = vpop.permute.xlu1 %587 }
  0x8e   :  { %514 = vst.msk [vmem:[#allocation3 + $0x40] sm:$0xff] %vm505_vm5, %v474_v47 }
  0x8f   :  { %628 = vst.msk [vmem:[#allocation3 + $0x40] sm:$0xff] %vm619_vm6, %v588_v48 }
  0xdb   :  { %v1671_v50 = vpop.f32.mrb[0].mxu0 }
  0xdc   :  { %v1683_v51 = vpop.f32.mrb[0].mxu1  ;;  %v172_v52 = vadd.f32 %v1671_v50, %v1975_v49  ;;  %v166_v54 = vpop.f32.mrb[1].mxu0 }
  0xdd   :  { %v212_v53 = vadd.f32 %v1683_v51, %v1975_v49  ;;  %v206_v55 = vpop.f32.mrb[1].mxu1  ;;  %v167_v56 = vadd.f32 %v1975_v49, %v166_v54 }
  0xde   :  { %v207_v57 = vadd.f32 %v1975_v49, %v206_v55  ;;  %v246_v58 = vmax.f32 %v172_v52, 0.0 }
  0xdf   :  { %v254_v59 = vmax.f32 %v212_v53, 0.0  ;;  %v245_v60 = vmax.f32 %v167_v56, 0.0  ;;  %v1674_v62 = vpop.f32.mrb[2].mxu0 }
  0xe0   :  { %v253_v61 = vmax.f32 %v207_v57, 0.0  ;;  %v1686_v63 = vpop.f32.mrb[2].mxu1  ;;  %305 = vst.msk [vmem:[#allocation2 + $0x21] sm:$0xff] %vm261_vm1, %v246_v58  ;;  %v182_v0 = vadd.f32 %v1674_v62, %v1975_v49  ;;  %v176_v1 = vpop.f32.mrb[3].mxu0 }
  0xe1   :  { %313 = vst.msk [vmem:[#allocation2 + $0xc1] sm:$0xff] %vm261_vm1, %v254_v59  ;;  %v222_v2 = vadd.f32 %v1686_v63, %v1975_v49  ;;  %v216_v3 = vpop.f32.mrb[3].mxu1  ;;  %304 = vst.msk [vmem:[#allocation2 + $0x11] sm:$0xff] %vm261_vm1, %v245_v60  ;;  %v177_v4 = vadd.f32 %v1975_v49, %v176_v1 }
  0xe2   :  { %312 = vst.msk [vmem:[#allocation2 + $0xb1] sm:$0xff] %vm261_vm1, %v253_v61  ;;  %v217_v5 = vadd.f32 %v1975_v49, %v216_v3  ;;  %v248_v6 = vmax.f32 %v182_v0, 0.0 }
  0xe3   :  { %v256_v7 = vmax.f32 %v222_v2, 0.0  ;;  %v247_v8 = vmax.f32 %v177_v4, 0.0  ;;  %v1677_v10 = vpop.f32.mrb[4].mxu0 }
  0xe4   :  { %v255_v9 = vmax.f32 %v217_v5, 0.0  ;;  %v1689_v11 = vpop.f32.mrb[4].mxu1  ;;  %307 = vst.msk [vmem:[#allocation2 + $0x41] sm:$0xff] %vm261_vm1, %v248_v6  ;;  %v192_v12 = vadd.f32 %v1677_v10, %v1975_v49  ;;  %v186_v13 = vpop.f32.mrb[5].mxu0 }
  0xe5   :  { %315 = vst.msk [vmem:[#allocation2 + $0xe1] sm:$0xff] %vm261_vm1, %v256_v7  ;;  %v232_v14 = vadd.f32 %v1689_v11, %v1975_v49  ;;  %v226_v15 = vpop.f32.mrb[5].mxu1  ;;  %306 = vst.msk [vmem:[#allocation2 + $0x31] sm:$0xff] %vm261_vm1, %v247_v8  ;;  %v187_v16 = vadd.f32 %v1975_v49, %v186_v13 }
  0xe6   :  { %314 = vst.msk [vmem:[#allocation2 + $0xd1] sm:$0xff] %vm261_vm1, %v255_v9  ;;  %v227_v17 = vadd.f32 %v1975_v49, %v226_v15  ;;  %v250_v18 = vmax.f32 %v192_v12, 0.0 }
  0xe7   :  { %v258_v19 = vmax.f32 %v232_v14, 0.0  ;;  %v324_v21 = vld [vmem:[#allocation2 + $0x20] sm:$0xff]  ;;  %v249_v22 = vmax.f32 %v187_v16, 0.0  ;;  %v325_v25 = vld [vmem:[#allocation2 + $0x28] sm:$0x3]  ;;  %v1680_v48 = vpop.f32.mrb[6].mxu0 }
  0xe8   :  { %v1997_v20 = vld [vmem:[#allocation2 + $0xc0] sm:$0xff]  ;;  %v257_v23 = vmax.f32 %v227_v17, 0.0  ;;  %640 = vrot.lane.b32.xlu1 %v324_v21, %s1798_s2  ;;  %362 = vst.msk [vmem:[#allocation3 + $0x10] sm:$0xff] %vm261_vm1, %v324_v21  ;;  %v2005_v24 = vld [vmem:[#allocation2 + $0x10] sm:$0xff]  ;;  %309 = vst.msk [vmem:[#allocation2 + $0x61] sm:$0xff] %vm261_vm1, %v250_v18  ;;  %v415_v27 = vrot.slane %v324_v21, 1  ;;  %v202_v51 = vadd.f32 %v1680_v48, %v1975_v49 }
  0xe9   :  { %656 = vrot.lane.b32.xlu0 %v1997_v20, %s1798_s2  ;;  %370 = vst.msk [vmem:[#allocation3 + $0x50] sm:$0xff] %vm261_vm1, %v1997_v20  ;;  %v2007_v26 = vld [vmem:[#allocation2 + $0xb0] sm:$0xff]  ;;  %317 = vst.msk [vmem:[#allocation2 + $0x101] sm:$0xff] %vm261_vm1, %v258_v19  ;;  %v416_v28 = vrot.slane %v325_v25, 1  ;;  %v529_v34 = vrot.slane %v324_v21, 2  ;;  %v530_v35 = vrot.slane %v325_v25, 2 }
  0xea   :  { %361 = vst.msk [vmem:[#allocation3 + $0x8] sm:$0xff] %vm261_vm1, %v2005_v24  ;;  %369 = vst.msk [vmem:[#allocation3 + $0x48] sm:$0xff] %vm261_vm1, %v2007_v26  ;;  %v345_v38 = vld [vmem:[#allocation2 + $0xc8] sm:$0x3]  ;;  %v439_v42 = vrot.slane %v1997_v20, 1  ;;  %v553_v46 = vrot.slane %v1997_v20, 2 }
  0xeb   :  { %308 = vst.msk [vmem:[#allocation2 + $0x51] sm:$0xff] %vm261_vm1, %v249_v22  ;;  %316 = vst.msk [vmem:[#allocation2 + $0xf1] sm:$0xff] %vm261_vm1, %v257_v23  ;;  %v2017_v29 = vld [vmem:[#allocation2 + $0x40] sm:$0xff]  ;;  %v417_v33 = vsel %vm408_vm3, %v415_v27, %v416_v28  ;;  %v531_v41 = vsel %vm522_vm4, %v529_v34, %v530_v35  ;;  %v440_v43 = vrot.slane %v345_v38, 1  ;;  %v554_v47 = vrot.slane %v345_v38, 2  ;;  %v196_v53 = vpop.f32.mrb[7].mxu0 }
  0xec   :  { %v2019_v30 = vld [vmem:[#allocation2 + $0xe0] sm:$0xff]  ;;  %849 = vrot.lane.b32.xlu1 %v324_v21, %s1793_s24  ;;  %364 = vst.msk [vmem:[#allocation3 + $0x20] sm:$0xff] %vm261_vm1, %v2017_v29  ;;  %v2028_v31 = vld [vmem:[#allocation2 + $0x30] sm:$0xff]  ;;  %v323_v50 = vld [vmem:[#allocation2 + $0x18] sm:$0x3]  ;;  %v252_v52 = vmax.f32 %v202_v51, 0.0  ;;  %v197_v57 = vadd.f32 %v1975_v49, %v196_v53 }
  0xed   :  { %638 = vrot.lane.b32.xlu0 %v2005_v24, %s1798_s2  ;;  %372 = vst.msk [vmem:[#allocation3 + $0x60] sm:$0xff] %vm261_vm1, %v2019_v30  ;;  %v2030_v32 = vld [vmem:[#allocation2 + $0xd0] sm:$0xff]  ;;  %363 = vst.msk [vmem:[#allocation3 + $0x18] sm:$0xff] %vm261_vm1, %v2028_v31  ;;  %v441_v45 = vsel %vm408_vm3, %v439_v42, %v440_v43  ;;  %v555_v54 = vsel %vm522_vm4, %v553_v46, %v554_v47  ;;  %v412_v55 = vrot.slane %v2005_v24, 1  ;;  %v413_v56 = vrot.slane %v323_v50, 1  ;;  %v1692_v3 = vpop.f32.mrb[6].mxu1 }
  0xee   :  { %371 = vst.msk [vmem:[#allocation3 + $0x58] sm:$0xff] %vm261_vm1, %v2030_v32  ;;  %311 = vst.msk [vmem:[#allocation2 + $0x81] sm:$0xff] %vm261_vm1, %v252_v52  ;;  %v251_v58 = vmax.f32 %v197_v57, 0.0  ;;  %v343_v60 = vld [vmem:[#allocation2 + $0xb8] sm:$0x3]  ;;  %v436_v61 = vrot.slane %v2007_v26, 1  ;;  %v242_v4 = vadd.f32 %v1692_v3, %v1975_v49 }
  0xef   :  { %v2037_v36 = vld [vmem:[#allocation2 + $0x60] sm:$0xff]  ;;  %v414_v59 = vsel %vm408_vm3, %v412_v55, %v413_v56  ;;  %v437_v62 = vrot.slane %v343_v60, 1  ;;  %v550_v1 = vrot.slane %v2007_v26, 2  ;;  %v551_v2 = vrot.slane %v343_v60, 2  ;;  %v236_v5 = vpop.f32.mrb[7].mxu1  ;;  %v1075_v47 = vld [vmem:[%s2671_s3 + $0x8] sm:$0xff]  ;;  %v2179_v55 = vpop.permute.xlu0 %936 }
  0xf0   :  { %v2039_v37 = vld [vmem:[#allocation2 + $0x100] sm:$0xff]  ;;  %865 = vrot.lane.b32.xlu1 %v1997_v20, %s1793_s24  ;;  %366 = vst.msk [vmem:[#allocation3 + $0x30] sm:$0xff] %vm261_vm1, %v2037_v36  ;;  %310 = vst.msk [vmem:[#allocation2 + $0x71] sm:$0xff] %vm261_vm1, %v251_v58  ;;  %v237_v7 = vadd.f32 %v1975_v49, %v236_v5  ;;  %v260_v8 = vmax.f32 %v242_v4, 0.0  ;;  %v526_v10 = vrot.slane %v2005_v24, 2  ;;  %v527_v11 = vrot.slane %v323_v50, 2 }
  0xf1   :  { %713 = vrot.lane.b32.xlu0 %v417_v33, %s1799_s19  ;;  %374 = vst.msk [vmem:[#allocation3 + $0x70] sm:$0xff] %vm261_vm1, %v2039_v37  ;;  %v438_v0 = vsel %vm408_vm3, %v436_v61, %v437_v62  ;;  %v552_v6 = vsel %vm522_vm4, %v550_v1, %v551_v2  ;;  %v329_v49 = vld [vmem:[#allocation2 + $0x48] sm:$0x3]  ;;  %v421_v14 = vrot.slane %v2017_v29, 1  ;;  %v535_v17 = vrot.slane %v2017_v29, 2  ;;  %v1074_v46 = vld [vmem:[%s2671_s3] sm:$0xff] }
  0xf2   :  { %v2048_v39 = vld [vmem:[#allocation2 + $0x50] sm:$0xff]  ;;  %v259_v9 = vmax.f32 %v237_v7, 0.0  ;;  %319 = vst.msk [vmem:[#allocation2 + $0x121] sm:$0xff] %vm261_vm1, %v260_v8  ;;  %v528_v12 = vsel %vm522_vm4, %v526_v10, %v527_v11  ;;  %v422_v15 = vrot.slane %v329_v49, 1  ;;  %v536_v18 = vrot.slane %v329_v49, 2  ;;  %v1077_v51 = vld [vmem:[%s2671_s3 + $0x18] sm:$0xff] }
  0xf3   :  { %v2050_v40 = vld [vmem:[#allocation2 + $0xf0] sm:$0xff]  ;;  %365 = vst.msk [vmem:[#allocation3 + $0x28] sm:$0xff] %vm261_vm1, %v2048_v39  ;;  %v349_v19 = vld [vmem:[#allocation2 + $0xe8] sm:$0x3]  ;;  %v445_v21 = vrot.slane %v2019_v30, 1  ;;  %v559_v24 = vrot.slane %v2019_v30, 2  ;;  %v1757_v50 = vpack.c.bf16 %v1075_v47, %v1074_v46 }
  0xf4   :  { %373 = vst.msk [vmem:[#allocation3 + $0x68] sm:$0xff] %vm261_vm1, %v2050_v40  ;;  %654 = vrot.lane.b32.xlu1 %v2007_v26, %s1798_s2  ;;  %318 = vst.msk [vmem:[#allocation2 + $0x111] sm:$0xff] %vm261_vm1, %v259_v9  ;;  %v423_v16 = vsel %vm408_vm3, %v421_v14, %v422_v15  ;;  %v537_v20 = vsel %vm522_vm4, %v535_v17, %v536_v18  ;;  %v446_v22 = vrot.slane %v349_v19, 1  ;;  %v560_v25 = vrot.slane %v349_v19, 2  ;;  %v327_v26 = vld [vmem:[#allocation2 + $0x38] sm:$0x3] }
  0xf5   :  { %784 = vrot.lane.b32.xlu0 %v531_v41, %s1800_s20  ;;  %v418_v28 = vrot.slane %v2028_v31, 1  ;;  %v533_v34 = vrot.slane %v327_v26, 2  ;;  %v442_v38 = vrot.slane %v2030_v32, 1  ;;  %v556_v43 = vrot.slane %v2030_v32, 2  ;;  %1758 = vmatprep.subr.bf16.mxu1 %v1757_v50  ;;  %v1078_v53 = vld [vmem:[%s2671_s3 + $0x20] sm:$0xf] }
  0xf6   :  { %v447_v23 = vsel %vm408_vm3, %v445_v21, %v446_v22  ;;  %v561_v27 = vsel %vm522_vm4, %v559_v24, %v560_v25  ;;  %1760 = vmatpush3.bf16.msra.mxu1 %v1757_v50  ;;  %v333_v58 = vld [vmem:[#allocation2 + $0x68] sm:$0x3]  ;;  %v427_v61 = vrot.slane %v2037_v36, 1  ;;  %v541_v3 = vrot.slane %v2037_v36, 2  ;;  %v331_v15 = vld [vmem:[#allocation2 + $0x58] sm:$0x3] }
  0xf7   :  { %v2082_v63 = vld [vmem:[#allocation2 + $0x70] sm:$0xff]  ;;  %v428_v62 = vrot.slane %v333_v58, 1  ;;  %v542_v4 = vrot.slane %v333_v58, 2  ;;  %v353_v5 = vld [vmem:[#allocation2 + $0x108] sm:$0x3]  ;;  %v451_v9 = vrot.slane %v2039_v37, 1 }
  0xf8   :  { %461 = vrot.lane.b32.xlu1 %v417_v33, %s1794_s9  ;;  %367 = vst.msk [vmem:[#allocation3 + $0x38] sm:$0xff] %vm261_vm1, %v2082_v63  ;;  %v452_v10 = vrot.slane %v353_v5, 1  ;;  %v565_v49 = vrot.slane %v2039_v37, 2  ;;  %v566_v14 = vrot.slane %v353_v5, 2  ;;  %v424_v19 = vrot.slane %v2048_v39, 1 }
  0xf9   :  { %477 = vrot.lane.b32.xlu0 %v441_v45, %s1794_s9  ;;  %v429_v2 = vsel %vm408_vm3, %v427_v61, %v428_v62  ;;  %v543_v8 = vsel %vm522_vm4, %v541_v3, %v542_v4  ;;  %v539_v24 = vrot.slane %v331_v15, 2  ;;  %v562_v46 = vrot.slane %v2050_v40, 2 }
  0xfa   :  { %v2228_v18 = vsel %vm522_vm4, %v565_v49, %v566_v14 }
  0xfb   :  { %v2107_v13 = vld [vmem:[#allocation2 + $0x110] sm:$0xff] }
  0xfc   :  { %575 = vrot.lane.b32.xlu1 %v531_v41, %s1795_s14  ;;  %375 = vst.msk [vmem:[#allocation3 + $0x78] sm:$0xff] %vm261_vm1, %v2107_v13 }
  0xfd   :  { %800 = vrot.lane.b32.xlu0 %v555_v54, %s1800_s20 }
 0x100   :  { %922 = vrot.lane.b32.xlu1 %v417_v33, %s1797_s16 }
 0x101   :  { %459 = vrot.lane.b32.xlu0 %v414_v59, %s1794_s9 }
 0x104   :  { %993 = vrot.lane.b32.xlu1 %v531_v41, %s1796_s15 }
 0x105   :  { %711 = vrot.lane.b32.xlu0 %v414_v59, %s1799_s19 }
 0x108   :  { %729 = vrot.lane.b32.xlu1 %v441_v45, %s1799_s19 }
 0x109   :  { %644 = vrot.lane.b32.xlu0 %v2017_v29, %s1798_s2 }
 0x10c   :  { %591 = vrot.lane.b32.xlu1 %v555_v54, %s1795_s14 }
 0x10d   :  { %475 = vrot.lane.b32.xlu0 %v438_v0, %s1794_s9 }
 0x110   :  { %938 = vrot.lane.b32.xlu1 %v441_v45, %s1797_s16 }
 0x111   :  { %589 = vrot.lane.b32.xlu0 %v552_v6, %s1795_s14 }
 0x114   :  { %1009 = vrot.lane.b32.xlu1 %v555_v54, %s1796_s15  ;;  %v2177_v54 = vpop.permute.xlu1 %1007 }
 0x115   :  { %798 = vrot.lane.b32.xlu0 %v552_v6, %s1800_s20 }
 0x118   :  { %573 = vrot.lane.b32.xlu1 %v528_v12, %s1795_s14 }
 0x119   :  { %660 = vrot.lane.b32.xlu0 %v2019_v30, %s1798_s2 }
 0x11c   :  { %782 = vrot.lane.b32.xlu1 %v528_v12, %s1800_s20  ;;  %v2219_v12 = vsel %vm408_vm3, %v451_v9, %v452_v10 }
 0x11d   :  { %851 = vrot.lane.b32.xlu0 %v2028_v31, %s1793_s24 }
 0x120   :  { %853 = vrot.lane.b32.xlu1 %v2017_v29, %s1793_s24  ;;  %v419_v29 = vrot.slane %v327_v26, 1 }
 0x121   :  { %867 = vrot.lane.b32.xlu0 %v2030_v32, %s1793_s24 }
 0x122   :  { %v420_v33 = vsel %vm408_vm3, %v418_v28, %v419_v29 }
 0x124   :  { %727 = vrot.lane.b32.xlu1 %v438_v0, %s1799_s19 }
 0x125   :  { %465 = vrot.lane.b32.xlu0 %v423_v16, %s1794_s9 }
 0x128   :  { %869 = vrot.lane.b32.xlu1 %v2019_v30, %s1793_s24  ;;  %v532_v30 = vrot.slane %v2028_v31, 2 }
 0x129   :  { %788 = vrot.lane.b32.xlu0 %v537_v20, %s1800_s20 }
 0x12a   :  { %v534_v35 = vsel %vm522_vm4, %v532_v30, %v533_v34  ;;  %v351_v30 = vld [vmem:[#allocation2 + $0xf8] sm:$0x3]  ;;  %v2262_v34 = vld [vmem:[#allocation2 + $0x80] sm:$0xff] }
 0x12b   :  { %v563_v47 = vrot.slane %v351_v30, 2  ;;  %v776_v4 = vrot.slane %v2262_v34, 2 }
 0x12c   :  { %642 = vrot.lane.b32.xlu1 %v2028_v31, %s1798_s2  ;;  %v347_v31 = vld [vmem:[#allocation2 + $0xd8] sm:$0x3] }
 0x12d   :  { %481 = vrot.lane.b32.xlu0 %v447_v23, %s1794_s9  ;;  %v443_v41 = vrot.slane %v347_v31, 1  ;;  %v557_v45 = vrot.slane %v347_v31, 2 }
 0x12f   :  { %v444_v42 = vsel %vm408_vm3, %v442_v38, %v443_v41  ;;  %v558_v48 = vsel %vm522_vm4, %v556_v43, %v557_v45  ;;  %v448_v38 = vrot.slane %v2050_v40, 1  ;;  %v449_v41 = vrot.slane %v351_v30, 1 }
 0x130   :  { %658 = vrot.lane.b32.xlu1 %v2030_v32, %s1798_s2  ;;  %v1076_v32 = vld [vmem:[%s2671_s3 + $0x10] sm:$0xff] }
 0x131   :  { %804 = vrot.lane.b32.xlu0 %v561_v27, %s1800_s20  ;;  %v1761_v52 = vpack.c.bf16 %v1077_v51, %v1076_v32  ;;  %v450_v45 = vsel %vm408_vm3, %v448_v38, %v449_v41  ;;  %v564_v32 = vsel %vm522_vm4, %v562_v46, %v563_v47  ;;  %v454_v38 = vrot.slane %v2107_v13, 1  ;;  %v359_v46 = vld [vmem:[#allocation2 + $0x138] sm:$0x3] }
 0x133   :  { %1762 = vmatprep.subr.bf16.mxu1 %v1761_v52 }
 0x134   :  { %717 = vrot.lane.b32.xlu1 %v423_v16, %s1799_s19  ;;  %1764 = vmatpush3.bf16.msra.mxu1 %v1761_v52 }
 0x135   :  { %463 = vrot.lane.b32.xlu0 %v420_v33, %s1794_s9  ;;  %1701 = vmatprep.subr.msk.mxu1 %vm1135_vm7, %v1078_v53 }
 0x138   :  { %579 = vrot.lane.b32.xlu1 %v537_v20, %s1795_s14  ;;  %1702 = vmatpush3.msk.msra.mxu1 %vm1135_vm7, %v1078_v53 }
 0x139   :  { %577 = vrot.lane.b32.xlu0 %v534_v35, %s1795_s14 }
 0x13c   :  { %926 = vrot.lane.b32.xlu1 %v423_v16, %s1797_s16 }
 0x13d   :  { %924 = vrot.lane.b32.xlu0 %v420_v33, %s1797_s16 }
 0x140   :  { %997 = vrot.lane.b32.xlu1 %v537_v20, %s1796_s15  ;;  %v425_v20 = vrot.slane %v331_v15, 1 }
 0x141   :  { %786 = vrot.lane.b32.xlu0 %v534_v35, %s1800_s20 }
 0x142   :  { %v2239_v22 = vsel %vm408_vm3, %v424_v19, %v425_v20 }
 0x144   :  { %733 = vrot.lane.b32.xlu1 %v447_v23, %s1799_s19 }
 0x145   :  { %648 = vrot.lane.b32.xlu0 %v2037_v36, %s1798_s2 }
 0x148   :  { %595 = vrot.lane.b32.xlu1 %v561_v27, %s1795_s14 }
 0x149   :  { %479 = vrot.lane.b32.xlu0 %v444_v42, %s1794_s9 }
 0x14c   :  { %942 = vrot.lane.b32.xlu1 %v447_v23, %s1797_s16  ;;  %v538_v23 = vrot.slane %v2048_v39, 2 }
 0x14d   :  { %593 = vrot.lane.b32.xlu0 %v558_v48, %s1795_s14 }
 0x150   :  { %1013 = vrot.lane.b32.xlu1 %v561_v27, %s1796_s15  ;;  %v2247_v27 = vsel %vm522_vm4, %v538_v23, %v539_v24 }
 0x151   :  { %940 = vrot.lane.b32.xlu0 %v444_v42, %s1797_s16 }
 0x154   :  { %715 = vrot.lane.b32.xlu1 %v420_v33, %s1799_s19 }
 0x155   :  { %802 = vrot.lane.b32.xlu0 %v558_v48, %s1800_s20 }
 0x158   :  { %995 = vrot.lane.b32.xlu1 %v534_v35, %s1796_s15 }
 0x159   :  { %664 = vrot.lane.b32.xlu0 %v2039_v37, %s1798_s2 }
 0x15a   :  { %v2187_v57 = vpop.permute.xlu1 %640 }
 0x15b   :  { %v2185_v56 = vpop.permute.xlu0 %656 }
 0x15c   :  { %857 = vrot.lane.b32.xlu1 %v2037_v36, %s1793_s24 }
 0x15d   :  { %855 = vrot.lane.b32.xlu0 %v2048_v39, %s1793_s24 }
 0x15e   :  { %v2193_v59 = vpop.permute.xlu1 %849 }
 0x15f   :  { %v639_v60 = vpop.permute.xlu0 %638 }
 0x160   :  { %687 = vst.msk [vmem:[#allocation3] sm:$0xff] %vm686_vm8, %v639_v60  ;;  %731 = vrot.lane.b32.xlu1 %v444_v42, %s1799_s19 }
 0x161   :  { %871 = vrot.lane.b32.xlu0 %v2050_v40, %s1793_s24 }
 0x162   :  { %v2200_v0 = vpop.permute.xlu1 %865 }
 0x163   :  { %v2202_v1 = vpop.permute.xlu0 %713 }
 0x164   :  { %1011 = vrot.lane.b32.xlu1 %v558_v48, %s1796_s15 }
 0x165   :  { %469 = vrot.lane.b32.xlu0 %v429_v2, %s1794_s9 }
 0x166   :  { %v655_v6 = vpop.permute.xlu1 %654 }
 0x167   :  { %v2208_v7 = vpop.permute.xlu0 %784  ;;  %695 = vst.msk [vmem:[#allocation3 + $0x40] sm:$0xff] %vm686_vm8, %v655_v6  ;;  %v357_v6 = vld [vmem:[#allocation2 + $0x128] sm:$0x3] }
 0x168   :  { %873 = vrot.lane.b32.xlu1 %v2039_v37, %s1793_s24 }
 0x169   :  { %792 = vrot.lane.b32.xlu0 %v543_v8, %s1800_s20 }
 0x16a   :  { %v462_v36 = vpop.permute.xlu1 %461 }
 0x16b   :  { %v478_v11 = vpop.permute.xlu0 %477  ;;  %508 = vst.msk [vmem:[#allocation3 + $0x10] sm:$0xff] %vm505_vm5, %v462_v36  ;;  %v709_v36 = vrot.slane %v357_v6, 1 }
 0x16c   :  { %516 = vst.msk [vmem:[#allocation3 + $0x50] sm:$0xff] %vm505_vm5, %v478_v11  ;;  %646 = vrot.lane.b32.xlu1 %v2048_v39, %s1798_s2  ;;  %v335_v11 = vld [vmem:[#allocation2 + $0x78] sm:$0x3] }
 0x16d   :  { %485 = vrot.lane.b32.xlu0 %v2219_v12, %s1794_s9  ;;  %v545_v23 = vrot.slane %v335_v11, 2 }
 0x16e   :  { %v576_v16 = vpop.permute.xlu1 %575 }
 0x16f   :  { %v801_v17 = vpop.permute.xlu0 %800  ;;  %622 = vst.msk [vmem:[#allocation3 + $0x10] sm:$0xff] %vm619_vm6, %v576_v16 }
 0x170   :  { %662 = vrot.lane.b32.xlu1 %v2050_v40, %s1798_s2 }
 0x171   :  { %808 = vrot.lane.b32.xlu0 %v2228_v18, %s1800_s20 }
 0x172   :  { %v2235_v37 = vpop.permute.xlu1 %922 }
 0x173   :  { %v460_v21 = vpop.permute.xlu0 %459 }
 0x174   :  { %507 = vst.msk [vmem:[#allocation3 + $0x8] sm:$0xff] %vm505_vm5, %v460_v21  ;;  %721 = vrot.lane.b32.xlu1 %v429_v2, %s1799_s19 }
 0x175   :  { %467 = vrot.lane.b32.xlu0 %v2239_v22, %s1794_s9 }
 0x176   :  { %v994_v25 = vpop.permute.xlu1 %993 }
 0x177   :  { %v712_v26 = vpop.permute.xlu0 %711 }
 0x178   :  { %760 = vst.msk [vmem:[#allocation3] sm:$0xff] %vm759_vm9, %v712_v26  ;;  %583 = vrot.lane.b32.xlu1 %v543_v8, %s1795_s14 }
 0x179   :  { %581 = vrot.lane.b32.xlu0 %v2247_v27, %s1795_s14 }
 0x17a   :  { %v730_v39 = vpop.permute.xlu1 %729 }
 0x17b   :  { %v2252_v28 = vpop.permute.xlu0 %644 }
 0x17c   :  { %930 = vrot.lane.b32.xlu1 %v429_v2, %s1797_s16 }
 0x17d   :  { %928 = vrot.lane.b32.xlu0 %v2239_v22, %s1797_s16 }
 0x17e   :  { %v592_v29 = vpop.permute.xlu1 %591 }
 0x17f   :  { %v476_v33 = vpop.permute.xlu0 %475  ;;  %630 = vst.msk [vmem:[#allocation3 + $0x50] sm:$0xff] %vm619_vm6, %v592_v29  ;;  %v780_v29 = vrot.slane %v357_v6, 2 }
 0x180   :  { %515 = vst.msk [vmem:[#allocation3 + $0x48] sm:$0xff] %vm505_vm5, %v476_v33  ;;  %1001 = vrot.lane.b32.xlu1 %v543_v8, %s1796_s15 }
 0x181   :  { %790 = vrot.lane.b32.xlu0 %v2247_v27, %s1800_s20 }
 0x182   :  { %v939_v35 = vpop.permute.xlu1 %938 }
 0x183   :  { %v590_v31 = vpop.permute.xlu0 %589 }
 0x184   :  { %629 = vst.msk [vmem:[#allocation3 + $0x48] sm:$0xff] %vm619_vm6, %v590_v31  ;;  %737 = vrot.lane.b32.xlu1 %v2219_v12, %s1799_s19 }
 0x185   :  { %696 = vst.msk [vmem:[#allocation3 + $0x48] sm:$0xff] %vm686_vm8, %v2185_v56  ;;  %652 = vrot.lane.b32.xlu0 %v2262_v34, %s1798_s2  ;;  %v2308_v56 = vld [vmem:[#allocation2 + $0x120] sm:$0xff] }
 0x186   :  { %769 = vst.msk [vmem:[#allocation3 + $0x48] sm:$0xff] %vm759_vm9, %v730_v39  ;;  %v1010_v42 = vpop.permute.xlu1 %1009  ;;  %v708_v9 = vrot.slane %v2308_v56, 1 }
 0x187   :  { %v799_v43 = vpop.permute.xlu0 %798  ;;  %840 = vst.msk [vmem:[#allocation3 + $0x48] sm:$0xff] %vm830_vm10, %v801_v17  ;;  %v430_v17 = vrot.slane %v2082_v63, 1 }
 0x188   :  { %599 = vrot.lane.b32.xlu1 %v2228_v18, %s1795_s14  ;;  %v710_v15 = vsel %vm408_vm3, %v708_v9, %v709_v36 }
 0x189   :  { %483 = vrot.lane.b32.xlu0 %v450_v45, %s1794_s9 }
 0x18a   :  { %v574_v48 = vpop.permute.xlu1 %573 }
 0x18b   :  { %v2279_v50 = vpop.permute.xlu0 %660  ;;  %621 = vst.msk [vmem:[#allocation3 + $0x8] sm:$0xff] %vm619_vm6, %v574_v48  ;;  %v568_v48 = vrot.slane %v2107_v13, 2 }
 0x18c   :  { %688 = vst.msk [vmem:[#allocation3 + $0x8] sm:$0xff] %vm686_vm8, %v2187_v57  ;;  %946 = vrot.lane.b32.xlu1 %v2219_v12, %s1797_s16  ;;  %v705_v12 = vrot.slane %v2262_v34, 1 }
 0x18d   :  { %597 = vrot.lane.b32.xlu0 %v564_v32, %s1795_s14  ;;  %761 = vst.msk [vmem:[#allocation3 + $0x8] sm:$0xff] %vm759_vm9, %v2202_v1 }
 0x18e   :  { %v783_v40 = vpop.permute.xlu1 %782  ;;  %832 = vst.msk [vmem:[#allocation3 + $0x8] sm:$0xff] %vm830_vm10, %v2208_v7 }
 0x18f   :  { %v852_v51 = vpop.permute.xlu0 %851  ;;  %831 = vst.msk [vmem:[#allocation3] sm:$0xff] %vm830_vm10, %v783_v40  ;;  %v920_v40 = vrot.slane %v359_v46, 1 }
 0x190   :  { %899 = vst.msk [vmem:[#allocation3 + $0x8] sm:$0xff] %vm897_vm11, %v852_v51  ;;  %898 = vst.msk [vmem:[#allocation3] sm:$0xff] %vm897_vm11, %v2193_v59  ;;  %1017 = vrot.lane.b32.xlu1 %v2228_v18, %s1796_s15  ;;  %v431_v18 = vrot.slane %v335_v11, 1 }
 0x191   :  { %944 = vrot.lane.b32.xlu0 %v450_v45, %s1797_s16  ;;  %971 = vst.msk [vmem:[#allocation3] sm:$0xff] %vm970_vm12, %v2235_v37 }
 0x192   :  { %1042 = vst.msk [vmem:[#allocation3] sm:$0xff] %vm1041_vm13, %v994_v25  ;;  %v2302_v52 = vpop.permute.xlu1 %853  ;;  %v432_v21 = vsel %vm408_vm3, %v430_v17, %v431_v18 }
 0x193   :  { %v868_v53 = vpop.permute.xlu0 %867 }
 0x194   :  { %907 = vst.msk [vmem:[#allocation3 + $0x48] sm:$0xff] %vm897_vm11, %v868_v53  ;;  %719 = vrot.lane.b32.xlu1 %v2239_v22, %s1799_s19  ;;  %v544_v22 = vrot.slane %v2082_v63, 2 }
 0x195   :  { %806 = vrot.lane.b32.xlu0 %v564_v32, %s1800_s20 }
 0x196   :  { %v728_v57 = vpop.permute.xlu1 %727  ;;  %v546_v26 = vsel %vm522_vm4, %v544_v22, %v545_v23 }
 0x197   :  { %v466_v58 = vpop.permute.xlu0 %465  ;;  %768 = vst.msk [vmem:[#allocation3 + $0x40] sm:$0xff] %vm759_vm9, %v728_v57 }
 0x198   :  { %510 = vst.msk [vmem:[#allocation3 + $0x20] sm:$0xff] %vm505_vm5, %v466_v58  ;;  %999 = vrot.lane.b32.xlu1 %v2247_v27, %s1796_s15 }
 0x199   :  { %839 = vst.msk [vmem:[#allocation3 + $0x40] sm:$0xff] %vm830_vm10, %v799_v43  ;;  %668 = vrot.lane.b32.xlu0 %v2308_v56, %s1798_s2  ;;  %v1058_v59 = vld [vmem:[#allocation3] sm:$0xff] }
 0x19a   :  { %906 = vst.msk [vmem:[#allocation3 + $0x40] sm:$0xff] %vm897_vm11, %v2200_v0  ;;  %v2320_v60 = vpop.permute.xlu1 %869  ;;  %1703 = vmatprep.mubr.msk.f32.mxu1 %vm1086_vm14, %v1058_v59  ;;  %v337_v0 = vld [vmem:[#allocation2 + $0x88] sm:$0x3] }
 0x19b   :  { %979 = vst.msk [vmem:[#allocation3 + $0x40] sm:$0xff] %vm970_vm12, %v939_v35  ;;  %v789_v61 = vpop.permute.xlu0 %788  ;;  %v777_v5 = vrot.slane %v337_v0, 2  ;;  %v706_v16 = vrot.slane %v337_v0, 1 }
 0x19c   :  { %1050 = vst.msk [vmem:[#allocation3 + $0x40] sm:$0xff] %vm1041_vm13, %v1010_v42  ;;  %861 = vrot.lane.b32.xlu1 %v2262_v34, %s1793_s24  ;;  %v355_v34 = vld [vmem:[#allocation2 + $0x118] sm:$0x3] }
 0x19d   :  { %877 = vrot.lane.b32.xlu0 %v2308_v56, %s1793_s24  ;;  %v778_v10 = vsel %vm522_vm4, %v776_v4, %v777_v5  ;;  %v707_v37 = vsel %vm408_vm3, %v705_v12, %v706_v16  ;;  %v455_v41 = vrot.slane %v355_v34, 1 }
 0x19e   :  { %v643_v62 = vpop.permute.xlu1 %642 }
 0x19f   :  { %v482_v1 = vpop.permute.xlu0 %481  ;;  %689 = vst.msk [vmem:[#allocation3 + $0x10] sm:$0xff] %vm686_vm8, %v643_v62  ;;  %v456_v47 = vsel %vm408_vm3, %v454_v38, %v455_v41  ;;  %v991_v62 = vrot.slane %v359_v46, 2 }
 0x1a0   :  { %518 = vst.msk [vmem:[#allocation3 + $0x60] sm:$0xff] %vm505_vm5, %v482_v1  ;;  %735 = vrot.lane.b32.xlu1 %v450_v45, %s1799_s19  ;;  %v358_v45 = vld [vmem:[#allocation2 + $0x130] sm:$0xff] }
 0x1a1   :  { %859 = vrot.lane.b32.xlu0 %v2082_v63, %s1793_s24 }
 0x1a2   :  { %v659_v2 = vpop.permute.xlu1 %658 }
 0x1a3   :  { %v2333_v3 = vpop.permute.xlu0 %804  ;;  %697 = vst.msk [vmem:[#allocation3 + $0x50] sm:$0xff] %vm686_vm8, %v659_v2 }
 0x1a4   :  { %1015 = vrot.lane.b32.xlu1 %v564_v32, %s1796_s15  ;;  %v919_v32 = vrot.slane %v358_v45, 1 }
 0x1a5   :  { %875 = vrot.lane.b32.xlu0 %v2107_v13, %s1793_s24 }
 0x1a6   :  { %v718_v7 = vpop.permute.xlu1 %717 }
 0x1a7   :  { %v464_v8 = vpop.permute.xlu0 %463 }
 0x1a8   :  { %509 = vst.msk [vmem:[#allocation3 + $0x18] sm:$0xff] %vm505_vm5, %v464_v8  ;;  %650 = vrot.lane.b32.xlu1 %v2082_v63, %s1798_s2 }
 0x1a9   :  { %796 = vrot.lane.b32.xlu0 %v778_v10, %s1800_s20 }
 0x1aa   :  { %v580_v49 = vpop.permute.xlu1 %579 }
 0x1ab   :  { %v578_v14 = vpop.permute.xlu0 %577  ;;  %624 = vst.msk [vmem:[#allocation3 + $0x20] sm:$0xff] %vm619_vm6, %v580_v49 }
 0x1ac   :  { %623 = vst.msk [vmem:[#allocation3 + $0x18] sm:$0xff] %vm619_vm6, %v578_v14  ;;  %666 = vrot.lane.b32.xlu1 %v2107_v13, %s1798_s2  ;;  %v921_v13 = vsel %vm408_vm3, %v919_v32, %v920_v40 }
 0x1ad   :  { %690 = vst.msk [vmem:[#allocation3 + $0x18] sm:$0xff] %vm686_vm8, %v2252_v28  ;;  %741 = vrot.lane.b32.xlu0 %v710_v15, %s1799_s19  ;;  %v779_v28 = vrot.slane %v2308_v56, 2 }
 0x1ae   :  { %763 = vst.msk [vmem:[#allocation3 + $0x18] sm:$0xff] %vm759_vm9, %v718_v7  ;;  %v927_v19 = vpop.permute.xlu1 %926 }
 0x1af   :  { %834 = vst.msk [vmem:[#allocation3 + $0x18] sm:$0xff] %vm830_vm10, %v789_v61  ;;  %v925_v20 = vpop.permute.xlu0 %924  ;;  %v781_v30 = vsel %vm522_vm4, %v779_v28, %v780_v29 }
 0x1b0   :  { %972 = vst.msk [vmem:[#allocation3 + $0x8] sm:$0xff] %vm970_vm12, %v925_v20  ;;  %725 = vrot.lane.b32.xlu1 %v707_v37, %s1799_s19 }
 0x1b1   :  { %471 = vrot.lane.b32.xlu0 %v432_v21, %s1794_s9 }
 0x1b2   :  { %v998_v24 = vpop.permute.xlu1 %997 }
 0x1b3   :  { %v787_v25 = vpop.permute.xlu0 %786 }
 0x1b4   :  { %934 = vrot.lane.b32.xlu1 %v707_v37, %s1797_s16 }
 0x1b5   :  { %585 = vrot.lane.b32.xlu0 %v546_v26, %s1795_s14 }
 0x1b6   :  { %v734_v27 = vpop.permute.xlu1 %733 }
 0x1b7   :  { %v2367_v39 = vpop.permute.xlu0 %648 }
 0x1b8   :  { %1005 = vrot.lane.b32.xlu1 %v778_v10, %s1796_s15 }
 0x1b9   :  { %932 = vrot.lane.b32.xlu0 %v432_v21, %s1797_s16 }
 0x1ba   :  { %v596_v63 = vpop.permute.xlu1 %595 }
 0x1bb   :  { %v480_v33 = vpop.permute.xlu0 %479  ;;  %632 = vst.msk [vmem:[#allocation3 + $0x60] sm:$0xff] %vm619_vm6, %v596_v63 }
 0x1bc   :  { %517 = vst.msk [vmem:[#allocation3 + $0x58] sm:$0xff] %vm505_vm5, %v480_v33  ;;  %812 = vrot.lane.b32.xlu1 %v781_v30, %s1800_s20 }
 0x1bd   :  { %794 = vrot.lane.b32.xlu0 %v546_v26, %s1800_s20 }
 0x1be   :  { %v943_v35 = vpop.permute.xlu1 %942 }
 0x1bf   :  { %v594_v31 = vpop.permute.xlu0 %593 }
 0x1c0   :  { %631 = vst.msk [vmem:[#allocation3 + $0x58] sm:$0xff] %vm619_vm6, %v594_v31  ;;  %723 = vrot.lane.b32.xlu1 %v432_v21, %s1799_s19 }
 0x1c1   :  { %698 = vst.msk [vmem:[#allocation3 + $0x58] sm:$0xff] %vm686_vm8, %v2279_v50  ;;  %950 = vrot.lane.b32.xlu0 %v710_v15, %s1797_s16  ;;  %v569_v50 = vrot.slane %v355_v34, 2 }
 0x1c2   :  { %771 = vst.msk [vmem:[#allocation3 + $0x58] sm:$0xff] %vm759_vm9, %v734_v27  ;;  %v1014_v42 = vpop.permute.xlu1 %1013 }
 0x1c3   :  { %842 = vst.msk [vmem:[#allocation3 + $0x58] sm:$0xff] %vm830_vm10, %v2333_v3  ;;  %v941_v43 = vpop.permute.xlu0 %940  ;;  %v570_v56 = vsel %vm522_vm4, %v568_v48, %v569_v50 }
 0x1c4   :  { %980 = vst.msk [vmem:[#allocation3 + $0x48] sm:$0xff] %vm970_vm12, %v941_v43  ;;  %1003 = vrot.lane.b32.xlu1 %v546_v26, %s1796_s15 }
 0x1c5   :  { %487 = vrot.lane.b32.xlu0 %v456_v47, %s1794_s9 }
 0x1c6   :  { %v716_v51 = vpop.permute.xlu1 %715 }
 0x1c7   :  { %v803_v53 = vpop.permute.xlu0 %802  ;;  %762 = vst.msk [vmem:[#allocation3 + $0x10] sm:$0xff] %vm759_vm9, %v716_v51  ;;  %v1300_v51 = vld [vmem:[%s2672_s5] sm:$0xf] }
 0x1c8   :  { %833 = vst.msk [vmem:[#allocation3 + $0x10] sm:$0xff] %vm830_vm10, %v787_v25  ;;  %879 = vrot.lane.b32.xlu1 %v358_v45, %s1793_s24  ;;  %1727 = vmatprep.subr.msk.mxu0 %vm1135_vm7, %v1300_v51 }
 0x1c9   :  { %601 = vrot.lane.b32.xlu0 %v570_v56, %s1795_s14  ;;  %900 = vst.msk [vmem:[#allocation3 + $0x10] sm:$0xff] %vm897_vm11, %v2302_v52  ;;  %v990_v52 = vrot.slane %v358_v45, 2  ;;  %1728 = vmatpush3.msk.msra.mxu0 %vm1135_vm7, %v1300_v51 }
 0x1ca   :  { %973 = vst.msk [vmem:[#allocation3 + $0x10] sm:$0xff] %vm970_vm12, %v927_v19  ;;  %v996_v57 = vpop.permute.xlu1 %995 }
 0x1cb   :  { %v2400_v58 = vpop.permute.xlu0 %664  ;;  %1044 = vst.msk [vmem:[#allocation3 + $0x10] sm:$0xff] %vm1041_vm13, %v998_v24  ;;  %1043 = vst.msk [vmem:[#allocation3 + $0x8] sm:$0xff] %vm1041_vm13, %v996_v57  ;;  %v992_v4 = vsel %vm522_vm4, %v990_v52, %v991_v62 }
 0x1cc   :  { %952 = vrot.lane.b32.xlu1 %v921_v13, %s1797_s16 }
 0x1cd   :  { %948 = vrot.lane.b32.xlu0 %v456_v47, %s1797_s16 }
 0x1ce   :  { %v2406_v59 = vpop.permute.xlu1 %857 }
 0x1cf   :  { %v856_v61 = vpop.permute.xlu0 %855 }
 0x1d0   :  { %901 = vst.msk [vmem:[#allocation3 + $0x18] sm:$0xff] %vm897_vm11, %v856_v61  ;;  %739 = vrot.lane.b32.xlu1 %v456_v47, %s1799_s19 }
 0x1d1   :  { %1019 = vrot.lane.b32.xlu0 %v570_v56, %s1796_s15 }
 0x1d2   :  { %v732_v1 = vpop.permute.xlu1 %731  ;;  %v1059_v2 = vld [vmem:[#allocation3 + $0x8] sm:$0xff]  ;;  %v1060_v3 = vld [vmem:[#allocation3 + $0x10] sm:$0xff] }
 0x1d3   :  { %v872_v0 = vpop.permute.xlu0 %871  ;;  %770 = vst.msk [vmem:[#allocation3 + $0x50] sm:$0xff] %vm759_vm9, %v732_v1  ;;  %1704 = vmatmul.mubr.msk.f32.vlgmr.msra.gmra.mrb[8].mxu1 %vm1086_vm14, %v1059_v2 }
 0x1d4   :  { %909 = vst.msk [vmem:[#allocation3 + $0x58] sm:$0xff] %vm897_vm11, %v872_v0  ;;  %810 = vrot.lane.b32.xlu1 %v570_v56, %s1800_s20  ;;  %1706 = vmatprep.mubr.msk.f32.mxu1 %vm1086_vm14, %v1060_v3  ;;  %v1066_v3 = vld [vmem:[#allocation3 + $0x40] sm:$0xff] }
 0x1d5   :  { %841 = vst.msk [vmem:[#allocation3 + $0x50] sm:$0xff] %vm830_vm10, %v803_v53  ;;  %1021 = vrot.lane.b32.xlu0 %v781_v30, %s1796_s15 }
 0x1d6   :  { %908 = vst.msk [vmem:[#allocation3 + $0x50] sm:$0xff] %vm897_vm11, %v2320_v60  ;;  %v1012_v5 = vpop.permute.xlu1 %1011 }
 0x1d7   :  { %981 = vst.msk [vmem:[#allocation3 + $0x50] sm:$0xff] %vm970_vm12, %v943_v35  ;;  %v470_v6 = vpop.permute.xlu0 %469 }
 0x1d8   :  { %1052 = vst.msk [vmem:[#allocation3 + $0x50] sm:$0xff] %vm1041_vm13, %v1014_v42  ;;  %1051 = vst.msk [vmem:[#allocation3 + $0x48] sm:$0xff] %vm1041_vm13, %v1012_v5  ;;  %1023 = vrot.lane.b32.xlu1 %v992_v4, %s1796_s15 }
 0x1d9   :  { %512 = vst.msk [vmem:[#allocation3 + $0x30] sm:$0xff] %vm505_vm5, %v470_v6 }
 0x1da   :  { %v874_v7 = vpop.permute.xlu1 %873 }
 0x1db   :  { %v793_v8 = vpop.permute.xlu0 %792 }
 0x1de   :  { %v647_v9 = vpop.permute.xlu1 %646 }
 0x1df   :  { %v486_v60 = vpop.permute.xlu0 %485  ;;  %691 = vst.msk [vmem:[#allocation3 + $0x20] sm:$0xff] %vm686_vm8, %v647_v9  ;;  %v1067_v5 = vld [vmem:[#allocation3 + $0x48] sm:$0xff]  ;;  %v1068_v6 = vld [vmem:[#allocation3 + $0x50] sm:$0xff] }
 0x1e0   :  { %520 = vst.msk [vmem:[#allocation3 + $0x70] sm:$0xff] %vm505_vm5, %v486_v60 }
 0x1e2   :  { %v663_v10 = vpop.permute.xlu1 %662 }
 0x1e3   :  { %v809_v36 = vpop.permute.xlu0 %808  ;;  %699 = vst.msk [vmem:[#allocation3 + $0x60] sm:$0xff] %vm686_vm8, %v663_v10 }
 0x1e6   :  { %v722_v11 = vpop.permute.xlu1 %721 }
 0x1e7   :  { %v468_v12 = vpop.permute.xlu0 %467 }
 0x1e8   :  { %511 = vst.msk [vmem:[#allocation3 + $0x28] sm:$0xff] %vm505_vm5, %v468_v12  ;;  %v1573_v12 = vld [vmem:[%s2673_s4] ss:$0 sm:$0xff] }
 0x1ea   :  { %v584_v49 = vpop.permute.xlu1 %583 }
 0x1eb   :  { %v582_v14 = vpop.permute.xlu0 %581  ;;  %626 = vst.msk [vmem:[#allocation3 + $0x30] sm:$0xff] %vm619_vm6, %v584_v49 }
 0x1ec   :  { %625 = vst.msk [vmem:[#allocation3 + $0x28] sm:$0xff] %vm619_vm6, %v582_v14 }
 0x1ed   :  { %692 = vst.msk [vmem:[#allocation3 + $0x28] sm:$0xff] %vm686_vm8, %v2367_v39 }
 0x1ee   :  { %765 = vst.msk [vmem:[#allocation3 + $0x28] sm:$0xff] %vm759_vm9, %v722_v11  ;;  %v931_v15 = vpop.permute.xlu1 %930 }
 0x1ef   :  { %836 = vst.msk [vmem:[#allocation3 + $0x28] sm:$0xff] %vm830_vm10, %v793_v8  ;;  %v929_v16 = vpop.permute.xlu0 %928 }
 0x1f0   :  { %974 = vst.msk [vmem:[#allocation3 + $0x18] sm:$0xff] %vm970_vm12, %v929_v16 }
 0x1f2   :  { %v1002_v17 = vpop.permute.xlu1 %1001 }
 0x1f3   :  { %v791_v18 = vpop.permute.xlu0 %790 }
 0x1f6   :  { %v738_v19 = vpop.permute.xlu1 %737 }
 0x1f7   :  { %v653_v20 = vpop.permute.xlu0 %652 }
 0x1fa   :  { %v600_v37 = vpop.permute.xlu1 %599 }
 0x1fb   :  { %v484_v21 = vpop.permute.xlu0 %483  ;;  %634 = vst.msk [vmem:[#allocation3 + $0x70] sm:$0xff] %vm619_vm6, %v600_v37 }
 0x1fc   :  { %519 = vst.msk [vmem:[#allocation3 + $0x68] sm:$0xff] %vm505_vm5, %v484_v21 }
 0x1fe   :  { %v947_v22 = vpop.permute.xlu1 %946 }
 0x1ff   :  { %v598_v23 = vpop.permute.xlu0 %597 }
 0x200   :  { %633 = vst.msk [vmem:[#allocation3 + $0x68] sm:$0xff] %vm619_vm6, %v598_v23 }
 0x201   :  { %700 = vst.msk [vmem:[#allocation3 + $0x68] sm:$0xff] %vm686_vm8, %v2400_v58 }
 0x202   :  { %773 = vst.msk [vmem:[#allocation3 + $0x68] sm:$0xff] %vm759_vm9, %v738_v19  ;;  %v1018_v24 = vpop.permute.xlu1 %1017 }
 0x203   :  { %844 = vst.msk [vmem:[#allocation3 + $0x68] sm:$0xff] %vm830_vm10, %v809_v36  ;;  %v945_v25 = vpop.permute.xlu0 %944 }
 0x204   :  { %982 = vst.msk [vmem:[#allocation3 + $0x58] sm:$0xff] %vm970_vm12, %v945_v25 }
 0x206   :  { %v720_v26 = vpop.permute.xlu1 %719 }
 0x207   :  { %v807_v27 = vpop.permute.xlu0 %806  ;;  %764 = vst.msk [vmem:[#allocation3 + $0x20] sm:$0xff] %vm759_vm9, %v720_v26 }
 0x208   :  { %835 = vst.msk [vmem:[#allocation3 + $0x20] sm:$0xff] %vm830_vm10, %v791_v18 }
 0x209   :  { %902 = vst.msk [vmem:[#allocation3 + $0x20] sm:$0xff] %vm897_vm11, %v2406_v59 }
 0x20a   :  { %975 = vst.msk [vmem:[#allocation3 + $0x20] sm:$0xff] %vm970_vm12, %v931_v15  ;;  %v1000_v39 = vpop.permute.xlu1 %999 }
 0x20b   :  { %v669_v28 = vpop.permute.xlu0 %668  ;;  %1046 = vst.msk [vmem:[#allocation3 + $0x20] sm:$0xff] %vm1041_vm13, %v1002_v17  ;;  %1045 = vst.msk [vmem:[#allocation3 + $0x18] sm:$0xff] %vm1041_vm13, %v1000_v39 }
 0x20e   :  { %v862_v29 = vpop.permute.xlu1 %861 }
 0x20f   :  { %v2452_v63 = vpop.permute.xlu0 %877 }
 0x212   :  { %v736_v33 = vpop.permute.xlu1 %735  ;;  %v1061_v34 = vld [vmem:[#allocation3 + $0x18] sm:$0xff]  ;;  %v1062_v35 = vld [vmem:[#allocation3 + $0x20] sm:$0xff] }
 0x213   :  { %v860_v30 = vpop.permute.xlu0 %859  ;;  %772 = vst.msk [vmem:[#allocation3 + $0x60] sm:$0xff] %vm759_vm9, %v736_v33  ;;  %1707 = vmatmul.mubr.msk.f32.gmra.mrb[10].mxu1 %vm1086_vm14, %v1061_v34 }
 0x214   :  { %903 = vst.msk [vmem:[#allocation3 + $0x28] sm:$0xff] %vm897_vm11, %v860_v30  ;;  %1709 = vmatprep.mubr.msk.f32.mxu1 %vm1086_vm14, %v1062_v35 }
 0x215   :  { %843 = vst.msk [vmem:[#allocation3 + $0x60] sm:$0xff] %vm830_vm10, %v807_v27 }
 0x216   :  { %910 = vst.msk [vmem:[#allocation3 + $0x60] sm:$0xff] %vm897_vm11, %v874_v7  ;;  %v1016_v31 = vpop.permute.xlu1 %1015 }
 0x217   :  { %983 = vst.msk [vmem:[#allocation3 + $0x60] sm:$0xff] %vm970_vm12, %v947_v22  ;;  %v876_v38 = vpop.permute.xlu0 %875 }
 0x218   :  { %1054 = vst.msk [vmem:[#allocation3 + $0x60] sm:$0xff] %vm1041_vm13, %v1018_v24  ;;  %1053 = vst.msk [vmem:[#allocation3 + $0x58] sm:$0xff] %vm1041_vm13, %v1016_v31 }
 0x219   :  { %911 = vst.msk [vmem:[#allocation3 + $0x68] sm:$0xff] %vm897_vm11, %v876_v38 }
 0x21a   :  { %v651_v41 = vpop.permute.xlu1 %650 }
 0x21b   :  { %v797_v42 = vpop.permute.xlu0 %796  ;;  %693 = vst.msk [vmem:[#allocation3 + $0x30] sm:$0xff] %vm686_vm8, %v651_v41 }
 0x21e   :  { %v667_v43 = vpop.permute.xlu1 %666 }
 0x21f   :  { %v742_v45 = vpop.permute.xlu0 %741  ;;  %701 = vst.msk [vmem:[#allocation3 + $0x70] sm:$0xff] %vm686_vm8, %v667_v43  ;;  %v1069_v9 = vld [vmem:[#allocation3 + $0x58] sm:$0xff]  ;;  %v1070_v60 = vld [vmem:[#allocation3 + $0x60] sm:$0xff] }
 0x222   :  { %v726_v46 = vpop.permute.xlu1 %725 }
 0x223   :  { %v472_v47 = vpop.permute.xlu0 %471 }
 0x224   :  { %513 = vst.msk [vmem:[#allocation3 + $0x38] sm:$0xff] %vm505_vm5, %v472_v47 }
 0x226   :  { %v935_v48 = vpop.permute.xlu1 %934 }
 0x227   :  { %v586_v50 = vpop.permute.xlu0 %585 }
 0x228   :  { %627 = vst.msk [vmem:[#allocation3 + $0x38] sm:$0xff] %vm619_vm6, %v586_v50 }
 0x229   :  { %694 = vst.msk [vmem:[#allocation3 + $0x38] sm:$0xff] %vm686_vm8, %v653_v20 }
 0x22a   :  { %767 = vst.msk [vmem:[#allocation3 + $0x38] sm:$0xff] %vm759_vm9, %v726_v46  ;;  %v1006_v32 = vpop.permute.xlu1 %1005 }
 0x22b   :  { %838 = vst.msk [vmem:[#allocation3 + $0x38] sm:$0xff] %vm830_vm10, %v797_v42  ;;  %v933_v40 = vpop.permute.xlu0 %932 }
 0x22c   :  { %905 = vst.msk [vmem:[#allocation3 + $0x38] sm:$0xff] %vm897_vm11, %v1966_v44 }
 0x22d   :  { %976 = vst.msk [vmem:[#allocation3 + $0x28] sm:$0xff] %vm970_vm12, %v933_v40  ;;  %978 = vst.msk [vmem:[#allocation3 + $0x38] sm:$0xff] %vm970_vm12, %v2179_v55 }
 0x22e   :  { %1049 = vst.msk [vmem:[#allocation3 + $0x38] sm:$0xff] %vm1041_vm13, %v2177_v54  ;;  %v813_v53 = vpop.permute.xlu1 %812 }
 0x22f   :  { %v795_v56 = vpop.permute.xlu0 %794 }
 0x232   :  { %v724_v13 = vpop.permute.xlu1 %723 }
 0x233   :  { %v951_v44 = vpop.permute.xlu0 %950  ;;  %766 = vst.msk [vmem:[#allocation3 + $0x30] sm:$0xff] %vm759_vm9, %v724_v13 }
 0x234   :  { %837 = vst.msk [vmem:[#allocation3 + $0x30] sm:$0xff] %vm830_vm10, %v795_v56 }
 0x235   :  { %904 = vst.msk [vmem:[#allocation3 + $0x30] sm:$0xff] %vm897_vm11, %v862_v29  ;;  %v1065_v2 = vld [vmem:[#allocation3 + $0x38] sm:$0xff] }
 0x236   :  { %977 = vst.msk [vmem:[#allocation3 + $0x30] sm:$0xff] %vm970_vm12, %v935_v48  ;;  %v1004_v55 = vpop.permute.xlu1 %1003 }
 0x237   :  { %v488_v57 = vpop.permute.xlu0 %487  ;;  %1048 = vst.msk [vmem:[#allocation3 + $0x30] sm:$0xff] %vm1041_vm13, %v1006_v32  ;;  %1047 = vst.msk [vmem:[#allocation3 + $0x28] sm:$0xff] %vm1041_vm13, %v1004_v55 }
 0x238   :  { %521 = vst.msk [vmem:[#allocation3 + $0x78] sm:$0xff] %vm505_vm5, %v488_v57 }
 0x23a   :  { %v880_v54 = vpop.permute.xlu1 %879 }
 0x23b   :  { %v602_v58 = vpop.permute.xlu0 %601 }
 0x23c   :  { %635 = vst.msk [vmem:[#allocation3 + $0x78] sm:$0xff] %vm619_vm6, %v602_v58 }
 0x23d   :  { %702 = vst.msk [vmem:[#allocation3 + $0x78] sm:$0xff] %vm686_vm8, %v669_v28 }
 0x23e   :  { %775 = vst.msk [vmem:[#allocation3 + $0x78] sm:$0xff] %vm759_vm9, %v742_v45  ;;  %v953_v59 = vpop.permute.xlu1 %952  ;;  %v1063_v52 = vld [vmem:[#allocation3 + $0x28] sm:$0xff]  ;;  %v1064_v62 = vld [vmem:[#allocation3 + $0x30] sm:$0xff] }
 0x23f   :  { %846 = vst.msk [vmem:[#allocation3 + $0x78] sm:$0xff] %vm830_vm10, %v813_v53  ;;  %v949_v61 = vpop.permute.xlu0 %948  ;;  %1710 = vmatmul.mubr.msk.f32.gmra.mrb[12].mxu1 %vm1086_vm14, %v1063_v52 }
 0x240   :  { %913 = vst.msk [vmem:[#allocation3 + $0x78] sm:$0xff] %vm897_vm11, %v880_v54  ;;  %1712 = vmatprep.mubr.msk.f32.mxu1 %vm1086_vm14, %v1064_v62  ;;  %v2538_v62 = vld [vmem:[%s2674_s6] ss:$0 sm:$0xff] }
 0x241   :  { %984 = vst.msk [vmem:[#allocation3 + $0x68] sm:$0xff] %vm970_vm12, %v949_v61  ;;  %986 = vst.msk [vmem:[#allocation3 + $0x78] sm:$0xff] %vm970_vm12, %v953_v59 }
 0x242   :  { %v740_v1 = vpop.permute.xlu1 %739 }
 0x243   :  { %v1020_v0 = vpop.permute.xlu0 %1019  ;;  %774 = vst.msk [vmem:[#allocation3 + $0x70] sm:$0xff] %vm759_vm9, %v740_v1  ;;  %1713 = vmatmul.mubr.msk.f32.gmra.mrb[14].mxu1 %vm1086_vm14, %v1065_v2 }
 0x244   :  { %1055 = vst.msk [vmem:[#allocation3 + $0x68] sm:$0xff] %vm1041_vm13, %v1020_v0  ;;  %1715 = vmatprep.mubr.msk.f32.mxu1 %vm1086_vm14, %v1066_v3 }
 0x246   :  { %v811_v4 = vpop.permute.xlu1 %810 }
 0x247   :  { %845 = vst.msk [vmem:[#allocation3 + $0x70] sm:$0xff] %vm830_vm10, %v811_v4  ;;  %1716 = vmatmul.mubr.msk.f32.gmra.mrb[16].mxu1 %vm1086_vm14, %v1067_v5  ;;  %v1022_v7 = vpop.permute.xlu0 %1021  ;;  %v1776_v4 = vld [vmem:[%s2669_s0 + $0x8] sm:$0xff] }
 0x248   :  { %912 = vst.msk [vmem:[#allocation3 + $0x70] sm:$0xff] %vm897_vm11, %v2452_v63  ;;  %1718 = vmatprep.mubr.msk.f32.mxu1 %vm1086_vm14, %v1068_v6  ;;  %v1777_v6 = vld [vmem:[%s2669_s0] sm:$0xff] }
 0x249   :  { %985 = vst.msk [vmem:[#allocation3 + $0x70] sm:$0xff] %vm970_vm12, %v951_v44 }
 0x24a   :  { %1056 = vst.msk [vmem:[#allocation3 + $0x70] sm:$0xff] %vm1041_vm13, %v1022_v7  ;;  %v1024_v8 = vpop.permute.xlu1 %1023 }
 0x24b   :  { %1057 = vst.msk [vmem:[#allocation3 + $0x78] sm:$0xff] %vm1041_vm13, %v1024_v8  ;;  %1719 = vmatmul.mubr.msk.f32.gmra.mrb[18].mxu1 %vm1086_vm14, %v1069_v9  ;;  %v1071_v10 = vld [vmem:[#allocation3 + $0x68] sm:$0xff] }
 0x24c   :  { %1721 = vmatprep.mubr.msk.f32.mxu1 %vm1086_vm14, %v1070_v60 }
 0x24f   :  { %1722 = vmatmul.mubr.msk.f32.gmra.mrb[20].mxu1 %vm1086_vm14, %v1071_v10 }
 0x251   :  { %v1072_v36 = vld [vmem:[#allocation3 + $0x70] sm:$0xff] }
 0x252   :  { %1724 = vmatprep.mubr.msk.f32.mxu1 %vm1086_vm14, %v1072_v36  ;;  %v1073_v11 = vld [vmem:[#allocation3 + $0x78] sm:$0xff] }
 0x253   :  { %1725 = vmatmul.mubr.msk.f32.gmra.mrb[22].mxu1 %vm1086_vm14, %v1073_v11 }
 0x2a6   :  { %v1705_v49 = vpop.f32.mrb[8].mxu1 }
 0x2a7   :  { %v1211_v14 = vadd.f32 %v1705_v49, %v1573_v12  ;;  %v1205_v15 = vpop.f32.mrb[9].mxu1 }
 0x2a8   :  { %v1206_v16 = vadd.f32 %v1573_v12, %v1205_v15 }
 0x2a9   :  { %v1285_v18 = vmax.f32 %v1211_v14, 0.0  ;;  %v1779_v14 = vld [vmem:[%s2669_s0 + $0x10] sm:$0xff] }
 0x2aa   :  { %v1284_v17 = vmax.f32 %v1206_v16, 0.0 }
 0x2ac   :  { %1729 = vmatprep.mubr.msk.f32.mxu0 %vm261_vm1, %v1284_v17 }
 0x2ad   :  { %1730 = vmatmul.mubr.msk.f32.vlgmr.msra.gmra.mrb[8].mxu0 %vm261_vm1, %v1285_v18 }
 0x2e6   :  { %v1708_v19 = vpop.f32.mrb[10].mxu1 }
 0x2e7   :  { %v1221_v20 = vadd.f32 %v1708_v19, %v1573_v12  ;;  %v1215_v37 = vpop.f32.mrb[11].mxu1 }
 0x2e8   :  { %v1216_v21 = vadd.f32 %v1573_v12, %v1215_v37 }
 0x2e9   :  { %v1287_v23 = vmax.f32 %v1221_v20, 0.0 }
 0x2ea   :  { %v1286_v22 = vmax.f32 %v1216_v21, 0.0  ;;  %v1780_v21 = vld [vmem:[%s2669_s0 + $0x28] sm:$0xff] }
 0x2ec   :  { %1732 = vmatprep.mubr.msk.f32.mxu0 %vm261_vm1, %v1286_v22 }
 0x2ed   :  { %1733 = vmatmul.mubr.msk.f32.gmra.mrb[10].mxu0 %vm261_vm1, %v1287_v23  ;;  %v1781_v23 = vld [vmem:[%s2669_s0 + $0x20] sm:$0xff] }
 0x312   :  { %v1711_v24 = vpop.f32.mrb[12].mxu1 }
 0x313   :  { %v1231_v25 = vadd.f32 %v1711_v24, %v1573_v12  ;;  %v1225_v26 = vpop.f32.mrb[13].mxu1 }
 0x314   :  { %v1226_v27 = vadd.f32 %v1573_v12, %v1225_v26 }
 0x315   :  { %v1289_v29 = vmax.f32 %v1231_v25, 0.0 }
 0x316   :  { %v1288_v39 = vmax.f32 %v1226_v27, 0.0  ;;  %v1714_v28 = vpop.f32.mrb[14].mxu1 }
 0x317   :  { %v1241_v63 = vadd.f32 %v1714_v28, %v1573_v12  ;;  %v1235_v33 = vpop.f32.mrb[15].mxu1 }
 0x318   :  { %v1236_v30 = vadd.f32 %v1573_v12, %v1235_v33  ;;  %1735 = vmatprep.mubr.msk.f32.mxu0 %vm261_vm1, %v1288_v39 }
 0x319   :  { %1736 = vmatmul.mubr.msk.f32.gmra.mrb[12].mxu0 %vm261_vm1, %v1289_v29  ;;  %v1291_v31 = vmax.f32 %v1241_v63, 0.0  ;;  %v1782_v63 = vld [vmem:[%s2669_s0 + $0x38] sm:$0xff] }
 0x31a   :  { %v1290_v34 = vmax.f32 %v1236_v30, 0.0  ;;  %v1717_v35 = vpop.f32.mrb[16].mxu1  ;;  %v1783_v30 = vld [vmem:[%s2669_s0 + $0x30] sm:$0xff] }
 0x31b   :  { %v1251_v38 = vadd.f32 %v1717_v35, %v1573_v12  ;;  %v1245_v41 = vpop.f32.mrb[17].mxu1 }
 0x31c   :  { %v1246_v42 = vadd.f32 %v1573_v12, %v1245_v41  ;;  %1738 = vmatprep.mubr.msk.f32.mxu0 %vm261_vm1, %v1290_v34 }
 0x31d   :  { %1739 = vmatmul.mubr.msk.f32.gmra.mrb[14].mxu0 %vm261_vm1, %v1291_v31  ;;  %v1293_v46 = vmax.f32 %v1251_v38, 0.0 }
 0x31e   :  { %v1292_v43 = vmax.f32 %v1246_v42, 0.0  ;;  %v1720_v45 = vpop.f32.mrb[18].mxu1 }
 0x31f   :  { %v1261_v47 = vadd.f32 %v1720_v45, %v1573_v12  ;;  %v1255_v48 = vpop.f32.mrb[19].mxu1  ;;  %v1784_v45 = vld [vmem:[%s2669_s0 + $0x48] sm:$0xff] }
 0x320   :  { %v1256_v50 = vadd.f32 %v1573_v12, %v1255_v48  ;;  %1741 = vmatprep.mubr.msk.f32.mxu0 %vm261_vm1, %v1292_v43 }
 0x321   :  { %1742 = vmatmul.mubr.msk.f32.gmra.mrb[16].mxu0 %vm261_vm1, %v1293_v46  ;;  %v1295_v51 = vmax.f32 %v1261_v47, 0.0  ;;  %v1785_v47 = vld [vmem:[%s2669_s0 + $0x40] sm:$0xff] }
 0x322   :  { %v1294_v32 = vmax.f32 %v1256_v50, 0.0  ;;  %v1723_v40 = vpop.f32.mrb[20].mxu1 }
 0x323   :  { %v1271_v53 = vadd.f32 %v1723_v40, %v1573_v12  ;;  %v1265_v56 = vpop.f32.mrb[21].mxu1 }
 0x324   :  { %v1266_v13 = vadd.f32 %v1573_v12, %v1265_v56  ;;  %1744 = vmatprep.mubr.msk.f32.mxu0 %vm261_vm1, %v1294_v32 }
 0x325   :  { %1745 = vmatmul.mubr.msk.f32.gmra.mrb[18].mxu0 %vm261_vm1, %v1295_v51  ;;  %v1297_v57 = vmax.f32 %v1271_v53, 0.0 }
 0x326   :  { %v1296_v44 = vmax.f32 %v1266_v13, 0.0  ;;  %v1726_v55 = vpop.f32.mrb[22].mxu1  ;;  %v1786_v13 = vld [vmem:[%s2669_s0 + $0x58] sm:$0xff] }
 0x327   :  { %v1281_v54 = vadd.f32 %v1726_v55, %v1573_v12  ;;  %v1275_v58 = vpop.f32.mrb[23].mxu1  ;;  %v1787_v55 = vld [vmem:[%s2669_s0 + $0x50] sm:$0xff] }
 0x328   :  { %v1276_v59 = vadd.f32 %v1573_v12, %v1275_v58  ;;  %1747 = vmatprep.mubr.msk.f32.mxu0 %vm261_vm1, %v1296_v44  ;;  %v1778_v12 = vld [vmem:[%s2669_s0 + $0x18] sm:$0xff] }
 0x329   :  { %1748 = vmatmul.mubr.msk.f32.gmra.mrb[20].mxu0 %vm261_vm1, %v1297_v57  ;;  %v1299_v52 = vmax.f32 %v1281_v54, 0.0 }
 0x32a   :  { %v1298_v61 = vmax.f32 %v1276_v59, 0.0 }
 0x32c   :  { %1750 = vmatprep.mubr.msk.f32.mxu0 %vm261_vm1, %v1298_v61 }
 0x32d   :  { %1751 = vmatmul.mubr.msk.f32.gmra.mrb[22].mxu0 %vm261_vm1, %v1299_v52 }
 0x380   :  { %v1731_v1 = vpop.f32.mrb[8].mxu0 }
 0x381   :  { %v1431_v0 = vadd.f32 %v1731_v1, %v2538_v62  ;;  %v1425_v2 = vpop.f32.mrb[9].mxu0 }
 0x382   :  { %v1426_v3 = vadd.f32 %v2538_v62, %v1425_v2 }
 0x383   :  { %v1505_v5 = vadd.f32 %v1776_v4, %v1431_v0  ;;  %v1788_v0 = vld [vmem:[%s2669_s0 + $0x68] sm:$0xff] }
 0x384   :  { %v1504_v7 = vadd.f32 %v1777_v6, %v1426_v3  ;;  %v1789_v3 = vld [vmem:[%s2669_s0 + $0x60] sm:$0xff] }
 0x385   :  { %v1521_v8 = vmax.f32 %v1505_v5, 0.0 }
 0x386   :  { %v1520_v9 = vmax.f32 %v1504_v7, 0.0 }
 0x387   :  { %1537 = vst.msk [vmem:[%s2675_s7 + $0x8] sm:$0xff] %vm51_vm0, %v1521_v8 }
 0x388   :  { %1536 = vst.msk [vmem:[%s2675_s7] sm:$0xff] %vm51_vm0, %v1520_v9 }
 0x3c0   :  { %v1734_v60 = vpop.f32.mrb[10].mxu0 }
 0x3c1   :  { %v1441_v10 = vadd.f32 %v1734_v60, %v2538_v62  ;;  %v1435_v36 = vpop.f32.mrb[11].mxu0 }
 0x3c2   :  { %v1436_v11 = vadd.f32 %v2538_v62, %v1435_v36 }
 0x3c3   :  { %v1507_v49 = vadd.f32 %v1778_v12, %v1441_v10  ;;  %v1790_v10 = vld [vmem:[%s2669_s0 + $0x78] sm:$0xff] }
 0x3c4   :  { %v1506_v15 = vadd.f32 %v1779_v14, %v1436_v11  ;;  %v1791_v11 = vld [vmem:[%s2669_s0 + $0x70] sm:$0xff] }
 0x3c5   :  { %v1523_v16 = vmax.f32 %v1507_v49, 0.0 }
 0x3c6   :  { %v1522_v17 = vmax.f32 %v1506_v15, 0.0 }
 0x3c7   :  { %1539 = vst.msk [vmem:[%s2675_s7 + $0x18] sm:$0xff] %vm51_vm0, %v1523_v16 }
 0x3c8   :  { %1538 = vst.msk [vmem:[%s2675_s7 + $0x10] sm:$0xff] %vm51_vm0, %v1522_v17 }
 0x3ec   :  { %v1737_v18 = vpop.f32.mrb[12].mxu0 }
 0x3ed   :  { %v1451_v19 = vadd.f32 %v1737_v18, %v2538_v62  ;;  %v1445_v20 = vpop.f32.mrb[13].mxu0 }
 0x3ee   :  { %v1446_v37 = vadd.f32 %v2538_v62, %v1445_v20 }
 0x3ef   :  { %v1509_v22 = vadd.f32 %v1780_v21, %v1451_v19 }
 0x3f0   :  { %v1508_v24 = vadd.f32 %v1781_v23, %v1446_v37  ;;  %v1740_v25 = vpop.f32.mrb[14].mxu0 }
 0x3f1   :  { %v1525_v26 = vmax.f32 %v1509_v22, 0.0  ;;  %v1461_v27 = vadd.f32 %v1740_v25, %v2538_v62  ;;  %v1455_v39 = vpop.f32.mrb[15].mxu0 }
 0x3f2   :  { %v1524_v28 = vmax.f32 %v1508_v24, 0.0  ;;  %v1456_v29 = vadd.f32 %v2538_v62, %v1455_v39 }
 0x3f3   :  { %1541 = vst.msk [vmem:[%s2675_s7 + $0x28] sm:$0xff] %vm51_vm0, %v1525_v26  ;;  %v1511_v33 = vadd.f32 %v1782_v63, %v1461_v27 }
 0x3f4   :  { %1540 = vst.msk [vmem:[%s2675_s7 + $0x20] sm:$0xff] %vm51_vm0, %v1524_v28  ;;  %v1510_v34 = vadd.f32 %v1783_v30, %v1456_v29  ;;  %v1743_v35 = vpop.f32.mrb[16].mxu0 }
 0x3f5   :  { %v1527_v31 = vmax.f32 %v1511_v33, 0.0  ;;  %v1471_v38 = vadd.f32 %v1743_v35, %v2538_v62  ;;  %v1465_v41 = vpop.f32.mrb[17].mxu0 }
 0x3f6   :  { %v1526_v42 = vmax.f32 %v1510_v34, 0.0  ;;  %v1466_v43 = vadd.f32 %v2538_v62, %v1465_v41 }
 0x3f7   :  { %1543 = vst.msk [vmem:[%s2675_s7 + $0x38] sm:$0xff] %vm51_vm0, %v1527_v31  ;;  %v1513_v46 = vadd.f32 %v1784_v45, %v1471_v38 }
 0x3f8   :  { %1542 = vst.msk [vmem:[%s2675_s7 + $0x30] sm:$0xff] %vm51_vm0, %v1526_v42  ;;  %v1512_v48 = vadd.f32 %v1785_v47, %v1466_v43  ;;  %v1746_v50 = vpop.f32.mrb[18].mxu0 }
 0x3f9   :  { %v1529_v32 = vmax.f32 %v1513_v46, 0.0  ;;  %v1481_v40 = vadd.f32 %v1746_v50, %v2538_v62  ;;  %v1475_v51 = vpop.f32.mrb[19].mxu0 }
 0x3fa   :  { %v1528_v53 = vmax.f32 %v1512_v48, 0.0  ;;  %v1476_v56 = vadd.f32 %v2538_v62, %v1475_v51 }
 0x3fb   :  { %1545 = vst.msk [vmem:[%s2675_s7 + $0x48] sm:$0xff] %vm51_vm0, %v1529_v32  ;;  %v1515_v44 = vadd.f32 %v1786_v13, %v1481_v40 }
 0x3fc   :  { %1544 = vst.msk [vmem:[%s2675_s7 + $0x40] sm:$0xff] %vm51_vm0, %v1528_v53  ;;  %v1514_v57 = vadd.f32 %v1787_v55, %v1476_v56  ;;  %v1749_v54 = vpop.f32.mrb[20].mxu0 }
 0x3fd   :  { %v1531_v58 = vmax.f32 %v1515_v44, 0.0  ;;  %v1491_v59 = vadd.f32 %v1749_v54, %v2538_v62  ;;  %v1485_v61 = vpop.f32.mrb[21].mxu0 }
 0x3fe   :  { %v1530_v52 = vmax.f32 %v1514_v57, 0.0  ;;  %v1486_v1 = vadd.f32 %v2538_v62, %v1485_v61 }
 0x3ff   :  { %1547 = vst.msk [vmem:[%s2675_s7 + $0x58] sm:$0xff] %vm51_vm0, %v1531_v58  ;;  %v1517_v2 = vadd.f32 %v1788_v0, %v1491_v59 }
 0x400   :  { %1546 = vst.msk [vmem:[%s2675_s7 + $0x50] sm:$0xff] %vm51_vm0, %v1530_v52  ;;  %v1516_v4 = vadd.f32 %v1789_v3, %v1486_v1  ;;  %v1752_v5 = vpop.f32.mrb[22].mxu0 }
 0x401   :  { %v1533_v6 = vmax.f32 %v1517_v2, 0.0  ;;  %v1501_v7 = vadd.f32 %v1752_v5, %v2538_v62  ;;  %v1495_v8 = vpop.f32.mrb[23].mxu0 }
 0x402   :  { %v1532_v9 = vmax.f32 %v1516_v4, 0.0  ;;  %v1496_v60 = vadd.f32 %v2538_v62, %v1495_v8 }
 0x403   :  { %1549 = vst.msk [vmem:[%s2675_s7 + $0x68] sm:$0xff] %vm51_vm0, %v1533_v6  ;;  %v1519_v36 = vadd.f32 %v1790_v10, %v1501_v7 }
 0x404   :  { %1548 = vst.msk [vmem:[%s2675_s7 + $0x60] sm:$0xff] %vm51_vm0, %v1532_v9  ;;  %v1518_v62 = vadd.f32 %v1791_v11, %v1496_v60 }
 0x405   :  { %v1535_v12 = vmax.f32 %v1519_v36, 0.0 }
 0x406   :  { %v1534_v49 = vmax.f32 %v1518_v62, 0.0 }
 0x407   :  { %1551 = vst.msk [vmem:[%s2675_s7 + $0x78] sm:$0xff] %vm51_vm0, %v1535_v12 }
 0x408   :  { %1550 = vst.msk [vmem:[%s2675_s7 + $0x70] sm:$0xff] %vm51_vm0, %v1534_v49 }

</bundles_post_ra>
